<compile_context>
chip_gen: v6e
topology: v6e:2x2x1
jax: 0.10.0
libtpu: 0.0.40
codegen_flags: <defaults>
</compile_context>

<pallas_src>
import functools

import jax
import jax.numpy as jnp
from jax import lax
from jax.experimental import pallas as pl
from jax.experimental.pallas import tpu as pltpu


# ----------------------------------------------------------------------------- kernel

def _decoder_b1_kernel(x_ref, skip_ref, skip2_ref,
                       wt_ref, bt_ref, w1_ref, s1_ref, w2_ref, s2_ref,
                       o_ref, act_ref, pat_ref, *, H, W, Hs, Ws):
    # x_ref:    (1, Cin,  Hs*Ws)   low-res decoder input (channel-major, flat)
    # skip_ref: (1, Cs,   H*W)     skip_features
    # skip2_ref:(1, Cs2,  H*W)     skip_features_b2
    # wt_ref:   (2, 2, Ct, Cin)    ConvTranspose2d weight, [di, dj, co, ci]
    # bt_ref:   (Ct, 1)            ConvTranspose2d bias
    # w1_ref:   (Co, 9*Cmid)       conv1 weight (BN scale folded), tap-major cols
    # s1_ref:   (Co, 1)            conv1 folded BN shift
    # w2_ref:   (Co, 9*Co)         conv2 weight (BN scale folded)
    # s2_ref:   (Co, 1)            conv2 folded BN shift
    # o_ref:    (1, Co, H*W)       output (NCHW, flat spatial)
    # act_ref:  (Cmid, H*W) VMEM   concatenated conv1 input
    # pat_ref:  (9*Cmid, H*W) VMEM im2col patch buffer (reused by both convs)
    HW = H * W
    HWs = Hs * Ws
    Ct = wt_ref.shape[2]
    Cs = skip_ref.shape[1]
    Cs2 = skip2_ref.shape[1]
    Cmid = Ct + Cs + Cs2

    w_shift = (W - 1).bit_length()    # log2(W)  (W is a power of two)
    ws_shift = (Ws - 1).bit_length()  # log2(Ws) (Ws is a power of two)

    # --------------------------------------------------------------------
    # ConvTranspose2d(kernel=2, stride=2) + bias:
    #   up[co, 2i+di, 2j+dj] = sum_ci Wt[ci, co, di, dj] * x[ci, i, j] + b[co]
    # Four (Ct,Cin)@(Cin,Hs*Ws) matmuls, scattered onto the lane-dense
    # (Ct, H*W) grid with 0/1 matrices built from 2-D iota (exact in f32).
    # --------------------------------------------------------------------
    x = x_ref[0]                                                   # (Cin, Hs*Ws)
    p_it = lax.broadcasted_iota(jnp.int32, (HWs, HW), 1)           # out pixel p
    q_it = lax.broadcasted_iota(jnp.int32, (HWs, HW), 0)           # src pixel q
    py_o = jnp.right_shift(p_it, w_shift)                          # p // W
    px_o = jnp.bitwise_and(p_it, W - 1)                            # p %  W
    qi = jnp.right_shift(q_it, ws_shift)                           # q // Ws
    qj = jnp.bitwise_and(q_it, Ws - 1)                             # q %  Ws

    up = jnp.zeros((Ct, HW), jnp.float32)
    for di in range(2):
        for dj in range(2):
            r = jnp.dot(wt_ref[di, dj], x,
                        preferred_element_type=jnp.float32)        # (Ct, Hs*Ws)
            sel = ((py_o == 2 * qi + di) &
                   (px_o == 2 * qj + dj)).astype(jnp.float32)      # (Hs*Ws, H*W)
            up = up + jnp.dot(r, sel, preferred_element_type=jnp.float32)
    up = up + bt_ref[...]                                          # bias (Ct,1)

    # --------------------------------------------------------------------
    # torch.cat([up, skip_features, skip_features_b2], dim=1)
    # (channel axis = sublanes of the VMEM scratch)
    # --------------------------------------------------------------------
    act_ref[0:Ct, :] = up
    act_ref[Ct:Ct + Cs, :] = skip_ref[0]
    act_ref[Ct + Cs:Cmid, :] = skip2_ref[0]

    # --------------------------------------------------------------------
    # 3x3 conv (padding=1, bias=False) + folded BN + ReLU as one im2col matmul.
    # Tap shifts are realized with static slice stores into pat_ref; the zero
    # padding is an iota boundary mask applied at store time.
    # --------------------------------------------------------------------
    lane = lax.broadcasted_iota(jnp.int32, (1, HW), 1)
    px = jnp.bitwise_and(lane, W - 1)                              # x coordinate
    py = jnp.right_shift(lane, w_shift)                            # y coordinate

    def conv3x3_bn_relu(a, w, shift):
        cin = a.shape[0]
        t = 0
        for dy in (-1, 0, 1):
            for dx in (-1, 0, 1):
                d = dy * W + dx                      # flat lane shift of this tap
                lo, hi = t * cin, (t + 1) * cin
                if d == 0:
                    pat_ref[lo:hi, :] = a
                else:
                    m = ((px + dx >= 0) & (px + dx < W) &
                         (py + dy >= 0) & (py + dy < H)).astype(jnp.float32)
                    if d > 0:
                        pat_ref[lo:hi, 0:HW - d] = a[:, d:HW] * m[:, 0:HW - d]
                        pat_ref[lo:hi, HW - d:HW] = jnp.zeros((cin, d), jnp.float32)
                    else:
                        e = -d
                        pat_ref[lo:hi, e:HW] = a[:, 0:HW - e] * m[:, e:HW]
                        pat_ref[lo:hi, 0:e] = jnp.zeros((cin, e), jnp.float32)
                t += 1
        patches = pat_ref[0:9 * cin, :]                            # (9*cin, H*W)
        y = jnp.dot(w, patches, preferred_element_type=jnp.float32) + shift
        return jnp.maximum(y, 0.0)                                 # (Co, H*W)

    a1 = conv3x3_bn_relu(act_ref[...], w1_ref[...], s1_ref[...])
    a2 = conv3x3_bn_relu(a1, w2_ref[...], s2_ref[...])
    o_ref[0] = a2.astype(o_ref.dtype)


# ----------------------------------------------------------------------------- wrapper

def _fold_bn_into_conv(w_oihw, gamma, beta, mean, var, eps=1e-5):
    """Fold eval-mode BatchNorm into a (Cout, 9*Cin) matmul weight + (Cout,1) bias."""
    scale = gamma / jnp.sqrt(var + eps)
    shift = beta - mean * scale
    cout = w_oihw.shape[0]
    # (Cout, Cin, 3, 3) -> (Cout, 3, 3, Cin) -> (Cout, 9*Cin):
    # column order = tap-major (ky, kx) then input channel, matching the kernel.
    w_mat = jnp.transpose(w_oihw, (0, 2, 3, 1)).reshape(cout, -1)
    return w_mat * scale[:, None], shift.reshape(cout, 1)


@jax.jit
def decoder_b1_forward(x, skip, skip_b2, params):
    N, Cin, Hs, Ws = x.shape
    _, Cs, H, W = skip.shape
    _, Cs2, _, _ = skip_b2.shape
    Ct = params["wt"].shape[1]            # conv_transpose out channels
    Co = params["w1"].shape[0]            # DoubleConv out channels
    Cmid = Ct + Cs + Cs2                  # channels after torch.cat
    HW, HWs = H * W, Hs * Ws
    assert H == 2 * Hs and W == 2 * Ws
    assert W & (W - 1) == 0 and Ws & (Ws - 1) == 0, "W must be a power of two"

    # Channel-major flat views (NCHW is already channel-major -> free reshapes).
    xf = x.reshape(N, Cin, HWs)
    sf = skip.reshape(N, Cs, HW)
    s2f = skip_b2.reshape(N, Cs2, HW)

    # ConvTranspose2d weight (Cin, Ct, 2, 2) -> (2, 2, Ct, Cin); bias -> (Ct, 1).
    wt_k = jnp.transpose(params["wt"], (2, 3, 1, 0))
    bt_k = params["bt"].reshape(Ct, 1)

    w1_k, s1_k = _fold_bn_into_conv(params["w1"], params["bn1_gamma"],
                                    params["bn1_beta"], params["bn1_mean"],
                                    params["bn1_var"])
    w2_k, s2_k = _fold_bn_into_conv(params["w2"], params["bn2_gamma"],
                                    params["bn2_beta"], params["bn2_mean"],
                                    params["bn2_var"])

    kernel = functools.partial(_decoder_b1_kernel, H=H, W=W, Hs=Hs, Ws=Ws)
    out = pl.pallas_call(
        kernel,
        out_shape=jax.ShapeDtypeStruct((N, Co, HW), jnp.float32),
        grid=(N,),
        in_specs=[
            pl.BlockSpec((1, Cin, HWs), lambda n: (n, 0, 0)),
            pl.BlockSpec((1, Cs, HW), lambda n: (n, 0, 0)),
            pl.BlockSpec((1, Cs2, HW), lambda n: (n, 0, 0)),
            pl.BlockSpec((2, 2, Ct, Cin), lambda n: (0, 0, 0, 0)),
            pl.BlockSpec((Ct, 1), lambda n: (0, 0)),
            pl.BlockSpec((Co, 9 * Cmid), lambda n: (0, 0)),
            pl.BlockSpec((Co, 1), lambda n: (0, 0)),
            pl.BlockSpec((Co, 9 * Co), lambda n: (0, 0)),
            pl.BlockSpec((Co, 1), lambda n: (0, 0)),
        ],
        out_specs=pl.BlockSpec((1, Co, HW), lambda n: (n, 0, 0)),
        scratch_shapes=[
            pltpu.VMEM((Cmid, HW), jnp.float32),       # concatenated activations
            pltpu.VMEM((9 * Cmid, HW), jnp.float32),   # im2col patch buffer
        ],
        compiler_params=pltpu.CompilerParams(dimension_semantics=("parallel",)),
    )(xf, sf, s2f, wt_k, bt_k, w1_k, s1_k, w2_k, s2_k)

    return out.reshape(N, Co, H, W)                    # already NCHW


# ----------------------------------------------------------------------------- reference (pure JAX)

def decoder_b1_reference(x, skip, skip_b2, params, eps=1e-5):
    hp = lax.Precision.HIGHEST
    # ConvTranspose2d(k=2, s=2): out[n,co,2i+d,2j+k] = sum_ci x[n,ci,i,j]*Wt[ci,co,d,k] + b[co]
    up = jnp.einsum("ncij,codk->noidjk", x, params["wt"], precision=hp)
    N, Co, Hs, _, Ws, _ = up.shape
    up = up.reshape(N, Co, 2 * Hs, 2 * Ws) + params["bt"][None, :, None, None]
    a = jnp.concatenate([up, skip, skip_b2], axis=1)

    def conv_bn_relu(a, w, g, b, m, v):
        y = lax.conv_general_dilated(a, w, (1, 1), ((1, 1), (1, 1)),
                                     dimension_numbers=("NCHW", "OIHW", "NCHW"),
                                     precision=hp)
        y = (y - m[None, :, None, None]) * (g / jnp.sqrt(v + eps))[None, :, None, None] \
            + b[None, :, None, None]
        return jnp.maximum(y, 0.0)

    a = conv_bn_relu(a, params["w1"], params["bn1_gamma"], params["bn1_beta"],
                     params["bn1_mean"], params["bn1_var"])
    a = conv_bn_relu(a, params["w2"], params["bn2_gamma"], params["bn2_beta"],
                     params["bn2_mean"], params["bn2_var"])
    return a


# ----------------------------------------------------------------------------- main

if __name__ == "__main__":
    # DecoderB1(in_channels=8, mid_channels=12, out_channels=4)
    #   x:                (2, 8, 8, 8)
    #   skip_features:    (2, 4, 16, 16)
    #   skip_features_b2: (2, 4, 16, 16)
    N, Cin, Co, Cs, Cs2 = 2, 8, 4, 4, 4
    Cmid = Co + Cs + Cs2                # channels after torch.cat == 12
    Hs = Ws = 8
    H, W = 2 * Hs, 2 * Ws

    key = jax.random.PRNGKey(0)
    ks = jax.random.split(key, 16)
    params = {
        # ConvTranspose2d weight (PyTorch layout (Cin, Cout, 2, 2)) and bias.
        "wt": jax.random.normal(ks[0], (Cin, Co, 2, 2), jnp.float32) * 0.2,
        "bt": 0.1 * jax.random.normal(ks[1], (Co,), jnp.float32),
        # DoubleConv conv weights (PyTorch OIHW layout, bias=False).
        "w1": jax.random.normal(ks[2], (Co, Cmid, 3, 3), jnp.float32) * 0.2,
        "w2": jax.random.normal(ks[3], (Co, Co, 3, 3), jnp.float32) * 0.2,
        # BatchNorm (eval mode) parameters / running stats.
        "bn1_gamma": 1.0 + 0.1 * jax.random.normal(ks[4], (Co,), jnp.float32),
        "bn1_beta": 0.1 * jax.random.normal(ks[5], (Co,), jnp.float32),
        "bn1_mean": 0.05 * jax.random.normal(ks[6], (Co,), jnp.float32),
        "bn1_var": 0.5 + jnp.abs(jax.random.normal(ks[7], (Co,), jnp.float32)) * 0.2,
        "bn2_gamma": 1.0 + 0.1 * jax.random.normal(ks[8], (Co,), jnp.float32),
        "bn2_beta": 0.1 * jax.random.normal(ks[9], (Co,), jnp.float32),
        "bn2_mean": 0.05 * jax.random.normal(ks[10], (Co,), jnp.float32),
        "bn2_var": 0.5 + jnp.abs(jax.random.normal(ks[11], (Co,), jnp.float32)) * 0.2,
    }

    x = jax.random.normal(ks[12], (N, Cin, Hs, Ws), jnp.float32)
    skip = jax.random.normal(ks[13], (N, Cs, H, W), jnp.float32)
    skip_b2 = jax.random.normal(ks[14], (N, Cs2, H, W), jnp.float32)

    out = jax.block_until_ready(decoder_b1_forward(x, skip, skip_b2, params))
    ref = decoder_b1_reference(x, skip, skip_b2, params)

    assert out.shape == (N, Co, H, W), out.shape
    max_err = float(jnp.max(jnp.abs(out - ref)))
    assert jnp.allclose(out, ref, rtol=2e-3, atol=2e-3), max_err

    print("KERNEL_OK")
</pallas_src>

<mosaic_0001>
module attributes {stable_mosaic.version = 11 : i64} {
  func.func @_decoder_b1_kernel(%arg0: i32, %arg1: memref<1x8x64xf32, #tpu.memory_space<vmem>>, %arg2: memref<1x4x256xf32, #tpu.memory_space<vmem>>, %arg3: memref<1x4x256xf32, #tpu.memory_space<vmem>>, %arg4: memref<2x2x4x8xf32, #tpu.memory_space<vmem>>, %arg5: memref<4x1xf32, #tpu.memory_space<vmem>>, %arg6: memref<4x108xf32, #tpu.memory_space<vmem>>, %arg7: memref<4x1xf32, #tpu.memory_space<vmem>>, %arg8: memref<4x36xf32, #tpu.memory_space<vmem>>, %arg9: memref<4x1xf32, #tpu.memory_space<vmem>>, %arg10: memref<1x4x256xf32, #tpu.memory_space<vmem>>, %arg11: memref<12x256xf32, #tpu.memory_space<vmem>>, %arg12: memref<108x256xf32, #tpu.memory_space<vmem>>) attributes {dimension_semantics = [#tpu.dimension_semantics<parallel>], iteration_bounds = array<i64: 2>, scalar_prefetch = 0 : i64, scratch_operands = 2 : i64, tpu.core_type = #tpu.core_type<tc>, window_params = [{transform_indices = @transform_0, window_bounds = array<i64: 1, 8, 64>}, {transform_indices = @transform_1, window_bounds = array<i64: 1, 4, 256>}, {transform_indices = @transform_2, window_bounds = array<i64: 1, 4, 256>}, {pipeline_mode = #tpu.pipeline_mode<synchronous>, transform_indices = @transform_3, window_bounds = array<i64: 2, 2, 4, 8>}, {pipeline_mode = #tpu.pipeline_mode<synchronous>, transform_indices = @transform_4, window_bounds = array<i64: 4, 1>}, {pipeline_mode = #tpu.pipeline_mode<synchronous>, transform_indices = @transform_5, window_bounds = array<i64: 4, 108>}, {pipeline_mode = #tpu.pipeline_mode<synchronous>, transform_indices = @transform_6, window_bounds = array<i64: 4, 1>}, {pipeline_mode = #tpu.pipeline_mode<synchronous>, transform_indices = @transform_7, window_bounds = array<i64: 4, 36>}, {pipeline_mode = #tpu.pipeline_mode<synchronous>, transform_indices = @transform_8, window_bounds = array<i64: 4, 1>}, {transform_indices = @transform_9, window_bounds = array<i64: 1, 4, 256>}]} {
    %c0 = arith.constant 0 : index
    %c0_0 = arith.constant 0 : index
    %c0_1 = arith.constant 0 : index
    %0 = vector.load %arg1[%c0, %c0_0, %c0_1] : memref<1x8x64xf32, #tpu.memory_space<vmem>>, vector<1x8x64xf32>
    %1 = vector.shape_cast %0 : vector<1x8x64xf32> to vector<8x64xf32>
    %2 = tpu.iota {dimensions = array<i32: 1>} : vector<64x256xi32>
    %3 = tpu.iota {dimensions = array<i32: 0>} : vector<64x256xi32>
    %c4_i32 = arith.constant 4 : i32
    %4 = vector.broadcast %c4_i32 : i32 to vector<64x256xi32>
    %5 = arith.shrsi %2, %4 : vector<64x256xi32>
    %c15_i32 = arith.constant 15 : i32
    %6 = vector.broadcast %c15_i32 : i32 to vector<64x256xi32>
    %7 = arith.andi %2, %6 : vector<64x256xi32>
    %c3_i32 = arith.constant 3 : i32
    %8 = vector.broadcast %c3_i32 : i32 to vector<64x256xi32>
    %9 = arith.shrsi %3, %8 : vector<64x256xi32>
    %c7_i32 = arith.constant 7 : i32
    %10 = vector.broadcast %c7_i32 : i32 to vector<64x256xi32>
    %11 = arith.andi %3, %10 : vector<64x256xi32>
    %cst = arith.constant 0.000000e+00 : f32
    %12 = vector.broadcast %cst : f32 to vector<4x256xf32>
    %c0_2 = arith.constant 0 : index
    %c0_3 = arith.constant 0 : index
    %c0_4 = arith.constant 0 : index
    %c0_5 = arith.constant 0 : index
    %13 = vector.load %arg4[%c0_2, %c0_3, %c0_4, %c0_5] : memref<2x2x4x8xf32, #tpu.memory_space<vmem>>, vector<1x1x4x8xf32>
    %14 = vector.shape_cast %13 : vector<1x1x4x8xf32> to vector<4x8xf32>
    %cst_6 = arith.constant dense<0.000000e+00> : vector<4x64xf32>
    %15 = tpu.matmul %14, %1, %cst_6 {dimension_numbers = #tpu.dot_dimension_numbers<[1], [0], [0], [1], [0, 0, 1, 1], [], []>} : vector<4x8xf32>, vector<8x64xf32>, vector<4x64xf32> -> vector<4x64xf32>
    %c2_i32 = arith.constant 2 : i32
    %16 = vector.broadcast %c2_i32 : i32 to vector<64x256xi32>
    %17 = arith.muli %16, %9 : vector<64x256xi32>
    %c0_i32 = arith.constant 0 : i32
    %18 = vector.broadcast %c0_i32 : i32 to vector<64x256xi32>
    %19 = arith.addi %17, %18 : vector<64x256xi32>
    %20 = arith.cmpi eq, %5, %19 : vector<64x256xi32>
    %c2_i32_7 = arith.constant 2 : i32
    %21 = vector.broadcast %c2_i32_7 : i32 to vector<64x256xi32>
    %22 = arith.muli %21, %11 : vector<64x256xi32>
    %c0_i32_8 = arith.constant 0 : i32
    %23 = vector.broadcast %c0_i32_8 : i32 to vector<64x256xi32>
    %24 = arith.addi %22, %23 : vector<64x256xi32>
    %25 = arith.cmpi eq, %7, %24 : vector<64x256xi32>
    %26 = arith.andi %20, %25 : vector<64x256xi1>
    %27 = arith.extui %26 : vector<64x256xi1> to vector<64x256xi32>
    %28 = arith.sitofp %27 : vector<64x256xi32> to vector<64x256xf32>
    %cst_9 = arith.constant dense<0.000000e+00> : vector<4x256xf32>
    %29 = tpu.matmul %15, %28, %cst_9 {dimension_numbers = #tpu.dot_dimension_numbers<[1], [0], [0], [1], [0, 0, 1, 1], [], []>} : vector<4x64xf32>, vector<64x256xf32>, vector<4x256xf32> -> vector<4x256xf32>
    %30 = arith.addf %12, %29 : vector<4x256xf32>
    %c0_10 = arith.constant 0 : index
    %c1 = arith.constant 1 : index
    %c0_11 = arith.constant 0 : index
    %c0_12 = arith.constant 0 : index
    %31 = vector.load %arg4[%c0_10, %c1, %c0_11, %c0_12] : memref<2x2x4x8xf32, #tpu.memory_space<vmem>>, vector<1x1x4x8xf32>
    %32 = vector.shape_cast %31 : vector<1x1x4x8xf32> to vector<4x8xf32>
    %cst_13 = arith.constant dense<0.000000e+00> : vector<4x64xf32>
    %33 = tpu.matmul %32, %1, %cst_13 {dimension_numbers = #tpu.dot_dimension_numbers<[1], [0], [0], [1], [0, 0, 1, 1], [], []>} : vector<4x8xf32>, vector<8x64xf32>, vector<4x64xf32> -> vector<4x64xf32>
    %c2_i32_14 = arith.constant 2 : i32
    %34 = vector.broadcast %c2_i32_14 : i32 to vector<64x256xi32>
    %35 = arith.muli %34, %9 : vector<64x256xi32>
    %c0_i32_15 = arith.constant 0 : i32
    %36 = vector.broadcast %c0_i32_15 : i32 to vector<64x256xi32>
    %37 = arith.addi %35, %36 : vector<64x256xi32>
    %38 = arith.cmpi eq, %5, %37 : vector<64x256xi32>
    %c2_i32_16 = arith.constant 2 : i32
    %39 = vector.broadcast %c2_i32_16 : i32 to vector<64x256xi32>
    %40 = arith.muli %39, %11 : vector<64x256xi32>
    %c1_i32 = arith.constant 1 : i32
    %41 = vector.broadcast %c1_i32 : i32 to vector<64x256xi32>
    %42 = arith.addi %40, %41 : vector<64x256xi32>
    %43 = arith.cmpi eq, %7, %42 : vector<64x256xi32>
    %44 = arith.andi %38, %43 : vector<64x256xi1>
    %45 = arith.extui %44 : vector<64x256xi1> to vector<64x256xi32>
    %46 = arith.sitofp %45 : vector<64x256xi32> to vector<64x256xf32>
    %cst_17 = arith.constant dense<0.000000e+00> : vector<4x256xf32>
    %47 = tpu.matmul %33, %46, %cst_17 {dimension_numbers = #tpu.dot_dimension_numbers<[1], [0], [0], [1], [0, 0, 1, 1], [], []>} : vector<4x64xf32>, vector<64x256xf32>, vector<4x256xf32> -> vector<4x256xf32>
    %48 = arith.addf %30, %47 : vector<4x256xf32>
    %c1_18 = arith.constant 1 : index
    %c0_19 = arith.constant 0 : index
    %c0_20 = arith.constant 0 : index
    %c0_21 = arith.constant 0 : index
    %49 = vector.load %arg4[%c1_18, %c0_19, %c0_20, %c0_21] : memref<2x2x4x8xf32, #tpu.memory_space<vmem>>, vector<1x1x4x8xf32>
    %50 = vector.shape_cast %49 : vector<1x1x4x8xf32> to vector<4x8xf32>
    %cst_22 = arith.constant dense<0.000000e+00> : vector<4x64xf32>
    %51 = tpu.matmul %50, %1, %cst_22 {dimension_numbers = #tpu.dot_dimension_numbers<[1], [0], [0], [1], [0, 0, 1, 1], [], []>} : vector<4x8xf32>, vector<8x64xf32>, vector<4x64xf32> -> vector<4x64xf32>
    %c2_i32_23 = arith.constant 2 : i32
    %52 = vector.broadcast %c2_i32_23 : i32 to vector<64x256xi32>
    %53 = arith.muli %52, %9 : vector<64x256xi32>
    %c1_i32_24 = arith.constant 1 : i32
    %54 = vector.broadcast %c1_i32_24 : i32 to vector<64x256xi32>
    %55 = arith.addi %53, %54 : vector<64x256xi32>
    %56 = arith.cmpi eq, %5, %55 : vector<64x256xi32>
    %c2_i32_25 = arith.constant 2 : i32
    %57 = vector.broadcast %c2_i32_25 : i32 to vector<64x256xi32>
    %58 = arith.muli %57, %11 : vector<64x256xi32>
    %c0_i32_26 = arith.constant 0 : i32
    %59 = vector.broadcast %c0_i32_26 : i32 to vector<64x256xi32>
    %60 = arith.addi %58, %59 : vector<64x256xi32>
    %61 = arith.cmpi eq, %7, %60 : vector<64x256xi32>
    %62 = arith.andi %56, %61 : vector<64x256xi1>
    %63 = arith.extui %62 : vector<64x256xi1> to vector<64x256xi32>
    %64 = arith.sitofp %63 : vector<64x256xi32> to vector<64x256xf32>
    %cst_27 = arith.constant dense<0.000000e+00> : vector<4x256xf32>
    %65 = tpu.matmul %51, %64, %cst_27 {dimension_numbers = #tpu.dot_dimension_numbers<[1], [0], [0], [1], [0, 0, 1, 1], [], []>} : vector<4x64xf32>, vector<64x256xf32>, vector<4x256xf32> -> vector<4x256xf32>
    %66 = arith.addf %48, %65 : vector<4x256xf32>
    %c1_28 = arith.constant 1 : index
    %c1_29 = arith.constant 1 : index
    %c0_30 = arith.constant 0 : index
    %c0_31 = arith.constant 0 : index
    %67 = vector.load %arg4[%c1_28, %c1_29, %c0_30, %c0_31] : memref<2x2x4x8xf32, #tpu.memory_space<vmem>>, vector<1x1x4x8xf32>
    %68 = vector.shape_cast %67 : vector<1x1x4x8xf32> to vector<4x8xf32>
    %cst_32 = arith.constant dense<0.000000e+00> : vector<4x64xf32>
    %69 = tpu.matmul %68, %1, %cst_32 {dimension_numbers = #tpu.dot_dimension_numbers<[1], [0], [0], [1], [0, 0, 1, 1], [], []>} : vector<4x8xf32>, vector<8x64xf32>, vector<4x64xf32> -> vector<4x64xf32>
    %c2_i32_33 = arith.constant 2 : i32
    %70 = vector.broadcast %c2_i32_33 : i32 to vector<64x256xi32>
    %71 = arith.muli %70, %9 : vector<64x256xi32>
    %c1_i32_34 = arith.constant 1 : i32
    %72 = vector.broadcast %c1_i32_34 : i32 to vector<64x256xi32>
    %73 = arith.addi %71, %72 : vector<64x256xi32>
    %74 = arith.cmpi eq, %5, %73 : vector<64x256xi32>
    %c2_i32_35 = arith.constant 2 : i32
    %75 = vector.broadcast %c2_i32_35 : i32 to vector<64x256xi32>
    %76 = arith.muli %75, %11 : vector<64x256xi32>
    %c1_i32_36 = arith.constant 1 : i32
    %77 = vector.broadcast %c1_i32_36 : i32 to vector<64x256xi32>
    %78 = arith.addi %76, %77 : vector<64x256xi32>
    %79 = arith.cmpi eq, %7, %78 : vector<64x256xi32>
    %80 = arith.andi %74, %79 : vector<64x256xi1>
    %81 = arith.extui %80 : vector<64x256xi1> to vector<64x256xi32>
    %82 = arith.sitofp %81 : vector<64x256xi32> to vector<64x256xf32>
    %cst_37 = arith.constant dense<0.000000e+00> : vector<4x256xf32>
    %83 = tpu.matmul %69, %82, %cst_37 {dimension_numbers = #tpu.dot_dimension_numbers<[1], [0], [0], [1], [0, 0, 1, 1], [], []>} : vector<4x64xf32>, vector<64x256xf32>, vector<4x256xf32> -> vector<4x256xf32>
    %84 = arith.addf %66, %83 : vector<4x256xf32>
    %c0_38 = arith.constant 0 : index
    %c0_39 = arith.constant 0 : index
    %85 = vector.load %arg5[%c0_38, %c0_39] : memref<4x1xf32, #tpu.memory_space<vmem>>, vector<4x1xf32>
    %86 = vector.broadcast %85 : vector<4x1xf32> to vector<4x256xf32>
    %87 = arith.addf %84, %86 : vector<4x256xf32>
    %c0_40 = arith.constant 0 : index
    %c0_41 = arith.constant 0 : index
    %88 = vector.load %arg11[%c0_40, %c0_41] : memref<12x256xf32, #tpu.memory_space<vmem>>, vector<4x256xf32>
    tpu.vector_store %arg11[%c0_40, %c0_41], %87 {strides = array<i32>} : memref<12x256xf32, #tpu.memory_space<vmem>>, vector<4x256xf32>,
    %c0_42 = arith.constant 0 : index
    %c0_43 = arith.constant 0 : index
    %c0_44 = arith.constant 0 : index
    %89 = vector.load %arg2[%c0_42, %c0_43, %c0_44] : memref<1x4x256xf32, #tpu.memory_space<vmem>>, vector<1x4x256xf32>
    %90 = vector.shape_cast %89 : vector<1x4x256xf32> to vector<4x256xf32>
    %c4 = arith.constant 4 : index
    %c0_45 = arith.constant 0 : index
    %91 = vector.load %arg11[%c4, %c0_45] : memref<12x256xf32, #tpu.memory_space<vmem>>, vector<4x256xf32>
    tpu.vector_store %arg11[%c4, %c0_45], %90 {strides = array<i32>} : memref<12x256xf32, #tpu.memory_space<vmem>>, vector<4x256xf32>,
    %c0_46 = arith.constant 0 : index
    %c0_47 = arith.constant 0 : index
    %c0_48 = arith.constant 0 : index
    %92 = vector.load %arg3[%c0_46, %c0_47, %c0_48] : memref<1x4x256xf32, #tpu.memory_space<vmem>>, vector<1x4x256xf32>
    %93 = vector.shape_cast %92 : vector<1x4x256xf32> to vector<4x256xf32>
    %c8 = arith.constant 8 : index
    %c0_49 = arith.constant 0 : index
    %94 = vector.load %arg11[%c8, %c0_49] : memref<12x256xf32, #tpu.memory_space<vmem>>, vector<4x256xf32>
    tpu.vector_store %arg11[%c8, %c0_49], %93 {strides = array<i32>} : memref<12x256xf32, #tpu.memory_space<vmem>>, vector<4x256xf32>,
    %95 = tpu.iota {dimensions = array<i32: 1>} : vector<1x256xi32>
    %c15_i32_50 = arith.constant 15 : i32
    %96 = vector.broadcast %c15_i32_50 : i32 to vector<1x256xi32>
    %97 = arith.andi %95, %96 : vector<1x256xi32>
    %c4_i32_51 = arith.constant 4 : i32
    %98 = vector.broadcast %c4_i32_51 : i32 to vector<1x256xi32>
    %99 = arith.shrsi %95, %98 : vector<1x256xi32>
    %c0_52 = arith.constant 0 : index
    %c0_53 = arith.constant 0 : index
    %100 = vector.load %arg11[%c0_52, %c0_53] : memref<12x256xf32, #tpu.memory_space<vmem>>, vector<12x256xf32>
    %c0_54 = arith.constant 0 : index
    %c0_55 = arith.constant 0 : index
    %101 = vector.load %arg6[%c0_54, %c0_55] : memref<4x108xf32, #tpu.memory_space<vmem>>, vector<4x108xf32>
    %c0_56 = arith.constant 0 : index
    %c0_57 = arith.constant 0 : index
    %102 = vector.load %arg7[%c0_56, %c0_57] : memref<4x1xf32, #tpu.memory_space<vmem>>, vector<4x1xf32>
    %c-1_i32 = arith.constant -1 : i32
    %103 = vector.broadcast %c-1_i32 : i32 to vector<1x256xi32>
    %104 = arith.addi %97, %103 : vector<1x256xi32>
    %c0_i32_58 = arith.constant 0 : i32
    %105 = vector.broadcast %c0_i32_58 : i32 to vector<1x256xi32>
    %106 = arith.cmpi sge, %104, %105 : vector<1x256xi32>
    %c-1_i32_59 = arith.constant -1 : i32
    %107 = vector.broadcast %c-1_i32_59 : i32 to vector<1x256xi32>
    %108 = arith.addi %97, %107 : vector<1x256xi32>
    %c16_i32 = arith.constant 16 : i32
    %109 = vector.broadcast %c16_i32 : i32 to vector<1x256xi32>
    %110 = arith.cmpi slt, %108, %109 : vector<1x256xi32>
    %111 = arith.andi %106, %110 : vector<1x256xi1>
    %c-1_i32_60 = arith.constant -1 : i32
    %112 = vector.broadcast %c-1_i32_60 : i32 to vector<1x256xi32>
    %113 = arith.addi %99, %112 : vector<1x256xi32>
    %c0_i32_61 = arith.constant 0 : i32
    %114 = vector.broadcast %c0_i32_61 : i32 to vector<1x256xi32>
    %115 = arith.cmpi sge, %113, %114 : vector<1x256xi32>
    %116 = arith.andi %111, %115 : vector<1x256xi1>
    %c-1_i32_62 = arith.constant -1 : i32
    %117 = vector.broadcast %c-1_i32_62 : i32 to vector<1x256xi32>
    %118 = arith.addi %99, %117 : vector<1x256xi32>
    %c16_i32_63 = arith.constant 16 : i32
    %119 = vector.broadcast %c16_i32_63 : i32 to vector<1x256xi32>
    %120 = arith.cmpi slt, %118, %119 : vector<1x256xi32>
    %121 = arith.andi %116, %120 : vector<1x256xi1>
    %122 = arith.extui %121 : vector<1x256xi1> to vector<1x256xi32>
    %123 = arith.sitofp %122 : vector<1x256xi32> to vector<1x256xf32>
    %124 = vector.extract_strided_slice %100 {offsets = [0, 0], sizes = [12, 239], strides = [1, 1]} : vector<12x256xf32> to vector<12x239xf32>
    %125 = vector.extract_strided_slice %123 {offsets = [0, 17], sizes = [1, 239], strides = [1, 1]} : vector<1x256xf32> to vector<1x239xf32>
    %126 = vector.broadcast %125 : vector<1x239xf32> to vector<12x239xf32>
    %127 = arith.mulf %124, %126 : vector<12x239xf32>
    %c0_64 = arith.constant 0 : index
    %c17 = arith.constant 17 : index
    %128 = vector.load %arg12[%c0_64, %c17] : memref<108x256xf32, #tpu.memory_space<vmem>>, vector<12x239xf32>
    tpu.vector_store %arg12[%c0_64, %c17], %127 {strides = array<i32>} : memref<108x256xf32, #tpu.memory_space<vmem>>, vector<12x239xf32>,
    %cst_65 = arith.constant 0.000000e+00 : f32
    %129 = vector.broadcast %cst_65 : f32 to vector<12x17xf32>
    %c0_66 = arith.constant 0 : index
    %c0_67 = arith.constant 0 : index
    %130 = vector.load %arg12[%c0_66, %c0_67] : memref<108x256xf32, #tpu.memory_space<vmem>>, vector<12x17xf32>
    tpu.vector_store %arg12[%c0_66, %c0_67], %129 {strides = array<i32>} : memref<108x256xf32, #tpu.memory_space<vmem>>, vector<12x17xf32>,
    %c0_i32_68 = arith.constant 0 : i32
    %131 = vector.broadcast %c0_i32_68 : i32 to vector<1x256xi32>
    %132 = arith.addi %97, %131 : vector<1x256xi32>
    %c0_i32_69 = arith.constant 0 : i32
    %133 = vector.broadcast %c0_i32_69 : i32 to vector<1x256xi32>
    %134 = arith.cmpi sge, %132, %133 : vector<1x256xi32>
    %c0_i32_70 = arith.constant 0 : i32
    %135 = vector.broadcast %c0_i32_70 : i32 to vector<1x256xi32>
    %136 = arith.addi %97, %135 : vector<1x256xi32>
    %c16_i32_71 = arith.constant 16 : i32
    %137 = vector.broadcast %c16_i32_71 : i32 to vector<1x256xi32>
    %138 = arith.cmpi slt, %136, %137 : vector<1x256xi32>
    %139 = arith.andi %134, %138 : vector<1x256xi1>
    %c-1_i32_72 = arith.constant -1 : i32
    %140 = vector.broadcast %c-1_i32_72 : i32 to vector<1x256xi32>
    %141 = arith.addi %99, %140 : vector<1x256xi32>
    %c0_i32_73 = arith.constant 0 : i32
    %142 = vector.broadcast %c0_i32_73 : i32 to vector<1x256xi32>
    %143 = arith.cmpi sge, %141, %142 : vector<1x256xi32>
    %144 = arith.andi %139, %143 : vector<1x256xi1>
    %c-1_i32_74 = arith.constant -1 : i32
    %145 = vector.broadcast %c-1_i32_74 : i32 to vector<1x256xi32>
    %146 = arith.addi %99, %145 : vector<1x256xi32>
    %c16_i32_75 = arith.constant 16 : i32
    %147 = vector.broadcast %c16_i32_75 : i32 to vector<1x256xi32>
    %148 = arith.cmpi slt, %146, %147 : vector<1x256xi32>
    %149 = arith.andi %144, %148 : vector<1x256xi1>
    %150 = arith.extui %149 : vector<1x256xi1> to vector<1x256xi32>
    %151 = arith.sitofp %150 : vector<1x256xi32> to vector<1x256xf32>
    %152 = vector.extract_strided_slice %100 {offsets = [0, 0], sizes = [12, 240], strides = [1, 1]} : vector<12x256xf32> to vector<12x240xf32>
    %153 = vector.extract_strided_slice %151 {offsets = [0, 16], sizes = [1, 240], strides = [1, 1]} : vector<1x256xf32> to vector<1x240xf32>
    %154 = vector.broadcast %153 : vector<1x240xf32> to vector<12x240xf32>
    %155 = arith.mulf %152, %154 : vector<12x240xf32>
    %c12 = arith.constant 12 : index
    %c16 = arith.constant 16 : index
    %156 = vector.load %arg12[%c12, %c16] : memref<108x256xf32, #tpu.memory_space<vmem>>, vector<12x240xf32>
    tpu.vector_store %arg12[%c12, %c16], %155 {strides = array<i32>} : memref<108x256xf32, #tpu.memory_space<vmem>>, vector<12x240xf32>,
    %cst_76 = arith.constant 0.000000e+00 : f32
    %157 = vector.broadcast %cst_76 : f32 to vector<12x16xf32>
    %c12_77 = arith.constant 12 : index
    %c0_78 = arith.constant 0 : index
    %158 = vector.load %arg12[%c12_77, %c0_78] : memref<108x256xf32, #tpu.memory_space<vmem>>, vector<12x16xf32>
    tpu.vector_store %arg12[%c12_77, %c0_78], %157 {strides = array<i32>} : memref<108x256xf32, #tpu.memory_space<vmem>>, vector<12x16xf32>,
    %c1_i32_79 = arith.constant 1 : i32
    %159 = vector.broadcast %c1_i32_79 : i32 to vector<1x256xi32>
    %160 = arith.addi %97, %159 : vector<1x256xi32>
    %c0_i32_80 = arith.constant 0 : i32
    %161 = vector.broadcast %c0_i32_80 : i32 to vector<1x256xi32>
    %162 = arith.cmpi sge, %160, %161 : vector<1x256xi32>
    %c1_i32_81 = arith.constant 1 : i32
    %163 = vector.broadcast %c1_i32_81 : i32 to vector<1x256xi32>
    %164 = arith.addi %97, %163 : vector<1x256xi32>
    %c16_i32_82 = arith.constant 16 : i32
    %165 = vector.broadcast %c16_i32_82 : i32 to vector<1x256xi32>
    %166 = arith.cmpi slt, %164, %165 : vector<1x256xi32>
    %167 = arith.andi %162, %166 : vector<1x256xi1>
    %c-1_i32_83 = arith.constant -1 : i32
    %168 = vector.broadcast %c-1_i32_83 : i32 to vector<1x256xi32>
    %169 = arith.addi %99, %168 : vector<1x256xi32>
    %c0_i32_84 = arith.constant 0 : i32
    %170 = vector.broadcast %c0_i32_84 : i32 to vector<1x256xi32>
    %171 = arith.cmpi sge, %169, %170 : vector<1x256xi32>
    %172 = arith.andi %167, %171 : vector<1x256xi1>
    %c-1_i32_85 = arith.constant -1 : i32
    %173 = vector.broadcast %c-1_i32_85 : i32 to vector<1x256xi32>
    %174 = arith.addi %99, %173 : vector<1x256xi32>
    %c16_i32_86 = arith.constant 16 : i32
    %175 = vector.broadcast %c16_i32_86 : i32 to vector<1x256xi32>
    %176 = arith.cmpi slt, %174, %175 : vector<1x256xi32>
    %177 = arith.andi %172, %176 : vector<1x256xi1>
    %178 = arith.extui %177 : vector<1x256xi1> to vector<1x256xi32>
    %179 = arith.sitofp %178 : vector<1x256xi32> to vector<1x256xf32>
    %180 = vector.extract_strided_slice %100 {offsets = [0, 0], sizes = [12, 241], strides = [1, 1]} : vector<12x256xf32> to vector<12x241xf32>
    %181 = vector.extract_strided_slice %179 {offsets = [0, 15], sizes = [1, 241], strides = [1, 1]} : vector<1x256xf32> to vector<1x241xf32>
    %182 = vector.broadcast %181 : vector<1x241xf32> to vector<12x241xf32>
    %183 = arith.mulf %180, %182 : vector<12x241xf32>
    %c24 = arith.constant 24 : index
    %c15 = arith.constant 15 : index
    %184 = vector.load %arg12[%c24, %c15] : memref<108x256xf32, #tpu.memory_space<vmem>>, vector<12x241xf32>
    tpu.vector_store %arg12[%c24, %c15], %183 {strides = array<i32>} : memref<108x256xf32, #tpu.memory_space<vmem>>, vector<12x241xf32>,
    %cst_87 = arith.constant 0.000000e+00 : f32
    %185 = vector.broadcast %cst_87 : f32 to vector<12x15xf32>
    %c24_88 = arith.constant 24 : index
    %c0_89 = arith.constant 0 : index
    %186 = vector.load %arg12[%c24_88, %c0_89] : memref<108x256xf32, #tpu.memory_space<vmem>>, vector<12x15xf32>
    tpu.vector_store %arg12[%c24_88, %c0_89], %185 {strides = array<i32>} : memref<108x256xf32, #tpu.memory_space<vmem>>, vector<12x15xf32>,
    %c-1_i32_90 = arith.constant -1 : i32
    %187 = vector.broadcast %c-1_i32_90 : i32 to vector<1x256xi32>
    %188 = arith.addi %97, %187 : vector<1x256xi32>
    %c0_i32_91 = arith.constant 0 : i32
    %189 = vector.broadcast %c0_i32_91 : i32 to vector<1x256xi32>
    %190 = arith.cmpi sge, %188, %189 : vector<1x256xi32>
    %c-1_i32_92 = arith.constant -1 : i32
    %191 = vector.broadcast %c-1_i32_92 : i32 to vector<1x256xi32>
    %192 = arith.addi %97, %191 : vector<1x256xi32>
    %c16_i32_93 = arith.constant 16 : i32
    %193 = vector.broadcast %c16_i32_93 : i32 to vector<1x256xi32>
    %194 = arith.cmpi slt, %192, %193 : vector<1x256xi32>
    %195 = arith.andi %190, %194 : vector<1x256xi1>
    %c0_i32_94 = arith.constant 0 : i32
    %196 = vector.broadcast %c0_i32_94 : i32 to vector<1x256xi32>
    %197 = arith.addi %99, %196 : vector<1x256xi32>
    %c0_i32_95 = arith.constant 0 : i32
    %198 = vector.broadcast %c0_i32_95 : i32 to vector<1x256xi32>
    %199 = arith.cmpi sge, %197, %198 : vector<1x256xi32>
    %200 = arith.andi %195, %199 : vector<1x256xi1>
    %c0_i32_96 = arith.constant 0 : i32
    %201 = vector.broadcast %c0_i32_96 : i32 to vector<1x256xi32>
    %202 = arith.addi %99, %201 : vector<1x256xi32>
    %c16_i32_97 = arith.constant 16 : i32
    %203 = vector.broadcast %c16_i32_97 : i32 to vector<1x256xi32>
    %204 = arith.cmpi slt, %202, %203 : vector<1x256xi32>
    %205 = arith.andi %200, %204 : vector<1x256xi1>
    %206 = arith.extui %205 : vector<1x256xi1> to vector<1x256xi32>
    %207 = arith.sitofp %206 : vector<1x256xi32> to vector<1x256xf32>
    %208 = vector.extract_strided_slice %100 {offsets = [0, 0], sizes = [12, 255], strides = [1, 1]} : vector<12x256xf32> to vector<12x255xf32>
    %209 = vector.extract_strided_slice %207 {offsets = [0, 1], sizes = [1, 255], strides = [1, 1]} : vector<1x256xf32> to vector<1x255xf32>
    %210 = vector.broadcast %209 : vector<1x255xf32> to vector<12x255xf32>
    %211 = arith.mulf %208, %210 : vector<12x255xf32>
    %c36 = arith.constant 36 : index
    %c1_98 = arith.constant 1 : index
    %212 = vector.load %arg12[%c36, %c1_98] : memref<108x256xf32, #tpu.memory_space<vmem>>, vector<12x255xf32>
    tpu.vector_store %arg12[%c36, %c1_98], %211 {strides = array<i32>} : memref<108x256xf32, #tpu.memory_space<vmem>>, vector<12x255xf32>,
    %cst_99 = arith.constant 0.000000e+00 : f32
    %213 = vector.broadcast %cst_99 : f32 to vector<12x1xf32>
    %c36_100 = arith.constant 36 : index
    %c0_101 = arith.constant 0 : index
    %214 = vector.load %arg12[%c36_100, %c0_101] : memref<108x256xf32, #tpu.memory_space<vmem>>, vector<12x1xf32>
    tpu.vector_store %arg12[%c36_100, %c0_101], %213 {strides = array<i32>} : memref<108x256xf32, #tpu.memory_space<vmem>>, vector<12x1xf32>,
    %c48 = arith.constant 48 : index
    %c0_102 = arith.constant 0 : index
    %215 = vector.load %arg12[%c48, %c0_102] : memref<108x256xf32, #tpu.memory_space<vmem>>, vector<12x256xf32>
    tpu.vector_store %arg12[%c48, %c0_102], %100 {strides = array<i32>} : memref<108x256xf32, #tpu.memory_space<vmem>>, vector<12x256xf32>,
    %c1_i32_103 = arith.constant 1 : i32
    %216 = vector.broadcast %c1_i32_103 : i32 to vector<1x256xi32>
    %217 = arith.addi %97, %216 : vector<1x256xi32>
    %c0_i32_104 = arith.constant 0 : i32
    %218 = vector.broadcast %c0_i32_104 : i32 to vector<1x256xi32>
    %219 = arith.cmpi sge, %217, %218 : vector<1x256xi32>
    %c1_i32_105 = arith.constant 1 : i32
    %220 = vector.broadcast %c1_i32_105 : i32 to vector<1x256xi32>
    %221 = arith.addi %97, %220 : vector<1x256xi32>
    %c16_i32_106 = arith.constant 16 : i32
    %222 = vector.broadcast %c16_i32_106 : i32 to vector<1x256xi32>
    %223 = arith.cmpi slt, %221, %222 : vector<1x256xi32>
    %224 = arith.andi %219, %223 : vector<1x256xi1>
    %c0_i32_107 = arith.constant 0 : i32
    %225 = vector.broadcast %c0_i32_107 : i32 to vector<1x256xi32>
    %226 = arith.addi %99, %225 : vector<1x256xi32>
    %c0_i32_108 = arith.constant 0 : i32
    %227 = vector.broadcast %c0_i32_108 : i32 to vector<1x256xi32>
    %228 = arith.cmpi sge, %226, %227 : vector<1x256xi32>
    %229 = arith.andi %224, %228 : vector<1x256xi1>
    %c0_i32_109 = arith.constant 0 : i32
    %230 = vector.broadcast %c0_i32_109 : i32 to vector<1x256xi32>
    %231 = arith.addi %99, %230 : vector<1x256xi32>
    %c16_i32_110 = arith.constant 16 : i32
    %232 = vector.broadcast %c16_i32_110 : i32 to vector<1x256xi32>
    %233 = arith.cmpi slt, %231, %232 : vector<1x256xi32>
    %234 = arith.andi %229, %233 : vector<1x256xi1>
    %235 = arith.extui %234 : vector<1x256xi1> to vector<1x256xi32>
    %236 = arith.sitofp %235 : vector<1x256xi32> to vector<1x256xf32>
    %237 = vector.extract_strided_slice %100 {offsets = [0, 1], sizes = [12, 255], strides = [1, 1]} : vector<12x256xf32> to vector<12x255xf32>
    %238 = vector.extract_strided_slice %236 {offsets = [0, 0], sizes = [1, 255], strides = [1, 1]} : vector<1x256xf32> to vector<1x255xf32>
    %239 = vector.broadcast %238 : vector<1x255xf32> to vector<12x255xf32>
    %240 = arith.mulf %237, %239 : vector<12x255xf32>
    %c60 = arith.constant 60 : index
    %c0_111 = arith.constant 0 : index
    %241 = vector.load %arg12[%c60, %c0_111] : memref<108x256xf32, #tpu.memory_space<vmem>>, vector<12x255xf32>
    tpu.vector_store %arg12[%c60, %c0_111], %240 {strides = array<i32>} : memref<108x256xf32, #tpu.memory_space<vmem>>, vector<12x255xf32>,
    %cst_112 = arith.constant 0.000000e+00 : f32
    %242 = vector.broadcast %cst_112 : f32 to vector<12x1xf32>
    %c60_113 = arith.constant 60 : index
    %c255 = arith.constant 255 : index
    %243 = vector.load %arg12[%c60_113, %c255] : memref<108x256xf32, #tpu.memory_space<vmem>>, vector<12x1xf32>
    tpu.vector_store %arg12[%c60_113, %c255], %242 {strides = array<i32>} : memref<108x256xf32, #tpu.memory_space<vmem>>, vector<12x1xf32>,
    %c-1_i32_114 = arith.constant -1 : i32
    %244 = vector.broadcast %c-1_i32_114 : i32 to vector<1x256xi32>
    %245 = arith.addi %97, %244 : vector<1x256xi32>
    %c0_i32_115 = arith.constant 0 : i32
    %246 = vector.broadcast %c0_i32_115 : i32 to vector<1x256xi32>
    %247 = arith.cmpi sge, %245, %246 : vector<1x256xi32>
    %c-1_i32_116 = arith.constant -1 : i32
    %248 = vector.broadcast %c-1_i32_116 : i32 to vector<1x256xi32>
    %249 = arith.addi %97, %248 : vector<1x256xi32>
    %c16_i32_117 = arith.constant 16 : i32
    %250 = vector.broadcast %c16_i32_117 : i32 to vector<1x256xi32>
    %251 = arith.cmpi slt, %249, %250 : vector<1x256xi32>
    %252 = arith.andi %247, %251 : vector<1x256xi1>
    %c1_i32_118 = arith.constant 1 : i32
    %253 = vector.broadcast %c1_i32_118 : i32 to vector<1x256xi32>
    %254 = arith.addi %99, %253 : vector<1x256xi32>
    %c0_i32_119 = arith.constant 0 : i32
    %255 = vector.broadcast %c0_i32_119 : i32 to vector<1x256xi32>
    %256 = arith.cmpi sge, %254, %255 : vector<1x256xi32>
    %257 = arith.andi %252, %256 : vector<1x256xi1>
    %c1_i32_120 = arith.constant 1 : i32
    %258 = vector.broadcast %c1_i32_120 : i32 to vector<1x256xi32>
    %259 = arith.addi %99, %258 : vector<1x256xi32>
    %c16_i32_121 = arith.constant 16 : i32
    %260 = vector.broadcast %c16_i32_121 : i32 to vector<1x256xi32>
    %261 = arith.cmpi slt, %259, %260 : vector<1x256xi32>
    %262 = arith.andi %257, %261 : vector<1x256xi1>
    %263 = arith.extui %262 : vector<1x256xi1> to vector<1x256xi32>
    %264 = arith.sitofp %263 : vector<1x256xi32> to vector<1x256xf32>
    %265 = vector.extract_strided_slice %100 {offsets = [0, 15], sizes = [12, 241], strides = [1, 1]} : vector<12x256xf32> to vector<12x241xf32>
    %266 = vector.extract_strided_slice %264 {offsets = [0, 0], sizes = [1, 241], strides = [1, 1]} : vector<1x256xf32> to vector<1x241xf32>
    %267 = vector.broadcast %266 : vector<1x241xf32> to vector<12x241xf32>
    %268 = arith.mulf %265, %267 : vector<12x241xf32>
    %c72 = arith.constant 72 : index
    %c0_122 = arith.constant 0 : index
    %269 = vector.load %arg12[%c72, %c0_122] : memref<108x256xf32, #tpu.memory_space<vmem>>, vector<12x241xf32>
    tpu.vector_store %arg12[%c72, %c0_122], %268 {strides = array<i32>} : memref<108x256xf32, #tpu.memory_space<vmem>>, vector<12x241xf32>,
    %cst_123 = arith.constant 0.000000e+00 : f32
    %270 = vector.broadcast %cst_123 : f32 to vector<12x15xf32>
    %c72_124 = arith.constant 72 : index
    %c241 = arith.constant 241 : index
    %271 = vector.load %arg12[%c72_124, %c241] : memref<108x256xf32, #tpu.memory_space<vmem>>, vector<12x15xf32>
    tpu.vector_store %arg12[%c72_124, %c241], %270 {strides = array<i32>} : memref<108x256xf32, #tpu.memory_space<vmem>>, vector<12x15xf32>,
    %c0_i32_125 = arith.constant 0 : i32
    %272 = vector.broadcast %c0_i32_125 : i32 to vector<1x256xi32>
    %273 = arith.addi %97, %272 : vector<1x256xi32>
    %c0_i32_126 = arith.constant 0 : i32
    %274 = vector.broadcast %c0_i32_126 : i32 to vector<1x256xi32>
    %275 = arith.cmpi sge, %273, %274 : vector<1x256xi32>
    %c0_i32_127 = arith.constant 0 : i32
    %276 = vector.broadcast %c0_i32_127 : i32 to vector<1x256xi32>
    %277 = arith.addi %97, %276 : vector<1x256xi32>
    %c16_i32_128 = arith.constant 16 : i32
    %278 = vector.broadcast %c16_i32_128 : i32 to vector<1x256xi32>
    %279 = arith.cmpi slt, %277, %278 : vector<1x256xi32>
    %280 = arith.andi %275, %279 : vector<1x256xi1>
    %c1_i32_129 = arith.constant 1 : i32
    %281 = vector.broadcast %c1_i32_129 : i32 to vector<1x256xi32>
    %282 = arith.addi %99, %281 : vector<1x256xi32>
    %c0_i32_130 = arith.constant 0 : i32
    %283 = vector.broadcast %c0_i32_130 : i32 to vector<1x256xi32>
    %284 = arith.cmpi sge, %282, %283 : vector<1x256xi32>
    %285 = arith.andi %280, %284 : vector<1x256xi1>
    %c1_i32_131 = arith.constant 1 : i32
    %286 = vector.broadcast %c1_i32_131 : i32 to vector<1x256xi32>
    %287 = arith.addi %99, %286 : vector<1x256xi32>
    %c16_i32_132 = arith.constant 16 : i32
    %288 = vector.broadcast %c16_i32_132 : i32 to vector<1x256xi32>
    %289 = arith.cmpi slt, %287, %288 : vector<1x256xi32>
    %290 = arith.andi %285, %289 : vector<1x256xi1>
    %291 = arith.extui %290 : vector<1x256xi1> to vector<1x256xi32>
    %292 = arith.sitofp %291 : vector<1x256xi32> to vector<1x256xf32>
    %293 = vector.extract_strided_slice %100 {offsets = [0, 16], sizes = [12, 240], strides = [1, 1]} : vector<12x256xf32> to vector<12x240xf32>
    %294 = vector.extract_strided_slice %292 {offsets = [0, 0], sizes = [1, 240], strides = [1, 1]} : vector<1x256xf32> to vector<1x240xf32>
    %295 = vector.broadcast %294 : vector<1x240xf32> to vector<12x240xf32>
    %296 = arith.mulf %293, %295 : vector<12x240xf32>
    %c84 = arith.constant 84 : index
    %c0_133 = arith.constant 0 : index
    %297 = vector.load %arg12[%c84, %c0_133] : memref<108x256xf32, #tpu.memory_space<vmem>>, vector<12x240xf32>
    tpu.vector_store %arg12[%c84, %c0_133], %296 {strides = array<i32>} : memref<108x256xf32, #tpu.memory_space<vmem>>, vector<12x240xf32>,
    %cst_134 = arith.constant 0.000000e+00 : f32
    %298 = vector.broadcast %cst_134 : f32 to vector<12x16xf32>
    %c84_135 = arith.constant 84 : index
    %c240 = arith.constant 240 : index
    %299 = vector.load %arg12[%c84_135, %c240] : memref<108x256xf32, #tpu.memory_space<vmem>>, vector<12x16xf32>
    tpu.vector_store %arg12[%c84_135, %c240], %298 {strides = array<i32>} : memref<108x256xf32, #tpu.memory_space<vmem>>, vector<12x16xf32>,
    %c1_i32_136 = arith.constant 1 : i32
    %300 = vector.broadcast %c1_i32_136 : i32 to vector<1x256xi32>
    %301 = arith.addi %97, %300 : vector<1x256xi32>
    %c0_i32_137 = arith.constant 0 : i32
    %302 = vector.broadcast %c0_i32_137 : i32 to vector<1x256xi32>
    %303 = arith.cmpi sge, %301, %302 : vector<1x256xi32>
    %c1_i32_138 = arith.constant 1 : i32
    %304 = vector.broadcast %c1_i32_138 : i32 to vector<1x256xi32>
    %305 = arith.addi %97, %304 : vector<1x256xi32>
    %c16_i32_139 = arith.constant 16 : i32
    %306 = vector.broadcast %c16_i32_139 : i32 to vector<1x256xi32>
    %307 = arith.cmpi slt, %305, %306 : vector<1x256xi32>
    %308 = arith.andi %303, %307 : vector<1x256xi1>
    %c1_i32_140 = arith.constant 1 : i32
    %309 = vector.broadcast %c1_i32_140 : i32 to vector<1x256xi32>
    %310 = arith.addi %99, %309 : vector<1x256xi32>
    %c0_i32_141 = arith.constant 0 : i32
    %311 = vector.broadcast %c0_i32_141 : i32 to vector<1x256xi32>
    %312 = arith.cmpi sge, %310, %311 : vector<1x256xi32>
    %313 = arith.andi %308, %312 : vector<1x256xi1>
    %c1_i32_142 = arith.constant 1 : i32
    %314 = vector.broadcast %c1_i32_142 : i32 to vector<1x256xi32>
    %315 = arith.addi %99, %314 : vector<1x256xi32>
    %c16_i32_143 = arith.constant 16 : i32
    %316 = vector.broadcast %c16_i32_143 : i32 to vector<1x256xi32>
    %317 = arith.cmpi slt, %315, %316 : vector<1x256xi32>
    %318 = arith.andi %313, %317 : vector<1x256xi1>
    %319 = arith.extui %318 : vector<1x256xi1> to vector<1x256xi32>
    %320 = arith.sitofp %319 : vector<1x256xi32> to vector<1x256xf32>
    %321 = vector.extract_strided_slice %100 {offsets = [0, 17], sizes = [12, 239], strides = [1, 1]} : vector<12x256xf32> to vector<12x239xf32>
    %322 = vector.extract_strided_slice %320 {offsets = [0, 0], sizes = [1, 239], strides = [1, 1]} : vector<1x256xf32> to vector<1x239xf32>
    %323 = vector.broadcast %322 : vector<1x239xf32> to vector<12x239xf32>
    %324 = arith.mulf %321, %323 : vector<12x239xf32>
    %c96 = arith.constant 96 : index
    %c0_144 = arith.constant 0 : index
    %325 = vector.load %arg12[%c96, %c0_144] : memref<108x256xf32, #tpu.memory_space<vmem>>, vector<12x239xf32>
    tpu.vector_store %arg12[%c96, %c0_144], %324 {strides = array<i32>} : memref<108x256xf32, #tpu.memory_space<vmem>>, vector<12x239xf32>,
    %cst_145 = arith.constant 0.000000e+00 : f32
    %326 = vector.broadcast %cst_145 : f32 to vector<12x17xf32>
    %c96_146 = arith.constant 96 : index
    %c239 = arith.constant 239 : index
    %327 = vector.load %arg12[%c96_146, %c239] : memref<108x256xf32, #tpu.memory_space<vmem>>, vector<12x17xf32>
    tpu.vector_store %arg12[%c96_146, %c239], %326 {strides = array<i32>} : memref<108x256xf32, #tpu.memory_space<vmem>>, vector<12x17xf32>,
    %c0_147 = arith.constant 0 : index
    %c0_148 = arith.constant 0 : index
    %328 = vector.load %arg12[%c0_147, %c0_148] : memref<108x256xf32, #tpu.memory_space<vmem>>, vector<108x256xf32>
    %cst_149 = arith.constant dense<0.000000e+00> : vector<4x256xf32>
    %329 = tpu.matmul %101, %328, %cst_149 {dimension_numbers = #tpu.dot_dimension_numbers<[1], [0], [0], [1], [0, 0, 1, 1], [], []>} : vector<4x108xf32>, vector<108x256xf32>, vector<4x256xf32> -> vector<4x256xf32>
    %330 = vector.broadcast %102 : vector<4x1xf32> to vector<4x256xf32>
    %331 = arith.addf %329, %330 : vector<4x256xf32>
    %cst_150 = arith.constant 0.000000e+00 : f32
    %332 = vector.broadcast %cst_150 : f32 to vector<4x256xf32>
    %333 = arith.maximumf %331, %332 : vector<4x256xf32>
    %c0_151 = arith.constant 0 : index
    %c0_152 = arith.constant 0 : index
    %334 = vector.load %arg8[%c0_151, %c0_152] : memref<4x36xf32, #tpu.memory_space<vmem>>, vector<4x36xf32>
    %c0_153 = arith.constant 0 : index
    %c0_154 = arith.constant 0 : index
    %335 = vector.load %arg9[%c0_153, %c0_154] : memref<4x1xf32, #tpu.memory_space<vmem>>, vector<4x1xf32>
    %c-1_i32_155 = arith.constant -1 : i32
    %336 = vector.broadcast %c-1_i32_155 : i32 to vector<1x256xi32>
    %337 = arith.addi %97, %336 : vector<1x256xi32>
    %c0_i32_156 = arith.constant 0 : i32
    %338 = vector.broadcast %c0_i32_156 : i32 to vector<1x256xi32>
    %339 = arith.cmpi sge, %337, %338 : vector<1x256xi32>
    %c-1_i32_157 = arith.constant -1 : i32
    %340 = vector.broadcast %c-1_i32_157 : i32 to vector<1x256xi32>
    %341 = arith.addi %97, %340 : vector<1x256xi32>
    %c16_i32_158 = arith.constant 16 : i32
    %342 = vector.broadcast %c16_i32_158 : i32 to vector<1x256xi32>
    %343 = arith.cmpi slt, %341, %342 : vector<1x256xi32>
    %344 = arith.andi %339, %343 : vector<1x256xi1>
    %c-1_i32_159 = arith.constant -1 : i32
    %345 = vector.broadcast %c-1_i32_159 : i32 to vector<1x256xi32>
    %346 = arith.addi %99, %345 : vector<1x256xi32>
    %c0_i32_160 = arith.constant 0 : i32
    %347 = vector.broadcast %c0_i32_160 : i32 to vector<1x256xi32>
    %348 = arith.cmpi sge, %346, %347 : vector<1x256xi32>
    %349 = arith.andi %344, %348 : vector<1x256xi1>
    %c-1_i32_161 = arith.constant -1 : i32
    %350 = vector.broadcast %c-1_i32_161 : i32 to vector<1x256xi32>
    %351 = arith.addi %99, %350 : vector<1x256xi32>
    %c16_i32_162 = arith.constant 16 : i32
    %352 = vector.broadcast %c16_i32_162 : i32 to vector<1x256xi32>
    %353 = arith.cmpi slt, %351, %352 : vector<1x256xi32>
    %354 = arith.andi %349, %353 : vector<1x256xi1>
    %355 = arith.extui %354 : vector<1x256xi1> to vector<1x256xi32>
    %356 = arith.sitofp %355 : vector<1x256xi32> to vector<1x256xf32>
    %357 = vector.extract_strided_slice %333 {offsets = [0, 0], sizes = [4, 239], strides = [1, 1]} : vector<4x256xf32> to vector<4x239xf32>
    %358 = vector.extract_strided_slice %356 {offsets = [0, 17], sizes = [1, 239], strides = [1, 1]} : vector<1x256xf32> to vector<1x239xf32>
    %359 = vector.broadcast %358 : vector<1x239xf32> to vector<4x239xf32>
    %360 = arith.mulf %357, %359 : vector<4x239xf32>
    %c0_163 = arith.constant 0 : index
    %c17_164 = arith.constant 17 : index
    %361 = vector.load %arg12[%c0_163, %c17_164] : memref<108x256xf32, #tpu.memory_space<vmem>>, vector<4x239xf32>
    tpu.vector_store %arg12[%c0_163, %c17_164], %360 {strides = array<i32>} : memref<108x256xf32, #tpu.memory_space<vmem>>, vector<4x239xf32>,
    %cst_165 = arith.constant 0.000000e+00 : f32
    %362 = vector.broadcast %cst_165 : f32 to vector<4x17xf32>
    %c0_166 = arith.constant 0 : index
    %c0_167 = arith.constant 0 : index
    %363 = vector.load %arg12[%c0_166, %c0_167] : memref<108x256xf32, #tpu.memory_space<vmem>>, vector<4x17xf32>
    tpu.vector_store %arg12[%c0_166, %c0_167], %362 {strides = array<i32>} : memref<108x256xf32, #tpu.memory_space<vmem>>, vector<4x17xf32>,
    %c0_i32_168 = arith.constant 0 : i32
    %364 = vector.broadcast %c0_i32_168 : i32 to vector<1x256xi32>
    %365 = arith.addi %97, %364 : vector<1x256xi32>
    %c0_i32_169 = arith.constant 0 : i32
    %366 = vector.broadcast %c0_i32_169 : i32 to vector<1x256xi32>
    %367 = arith.cmpi sge, %365, %366 : vector<1x256xi32>
    %c0_i32_170 = arith.constant 0 : i32
    %368 = vector.broadcast %c0_i32_170 : i32 to vector<1x256xi32>
    %369 = arith.addi %97, %368 : vector<1x256xi32>
    %c16_i32_171 = arith.constant 16 : i32
    %370 = vector.broadcast %c16_i32_171 : i32 to vector<1x256xi32>
    %371 = arith.cmpi slt, %369, %370 : vector<1x256xi32>
    %372 = arith.andi %367, %371 : vector<1x256xi1>
    %c-1_i32_172 = arith.constant -1 : i32
    %373 = vector.broadcast %c-1_i32_172 : i32 to vector<1x256xi32>
    %374 = arith.addi %99, %373 : vector<1x256xi32>
    %c0_i32_173 = arith.constant 0 : i32
    %375 = vector.broadcast %c0_i32_173 : i32 to vector<1x256xi32>
    %376 = arith.cmpi sge, %374, %375 : vector<1x256xi32>
    %377 = arith.andi %372, %376 : vector<1x256xi1>
    %c-1_i32_174 = arith.constant -1 : i32
    %378 = vector.broadcast %c-1_i32_174 : i32 to vector<1x256xi32>
    %379 = arith.addi %99, %378 : vector<1x256xi32>
    %c16_i32_175 = arith.constant 16 : i32
    %380 = vector.broadcast %c16_i32_175 : i32 to vector<1x256xi32>
    %381 = arith.cmpi slt, %379, %380 : vector<1x256xi32>
    %382 = arith.andi %377, %381 : vector<1x256xi1>
    %383 = arith.extui %382 : vector<1x256xi1> to vector<1x256xi32>
    %384 = arith.sitofp %383 : vector<1x256xi32> to vector<1x256xf32>
    %385 = vector.extract_strided_slice %333 {offsets = [0, 0], sizes = [4, 240], strides = [1, 1]} : vector<4x256xf32> to vector<4x240xf32>
    %386 = vector.extract_strided_slice %384 {offsets = [0, 16], sizes = [1, 240], strides = [1, 1]} : vector<1x256xf32> to vector<1x240xf32>
    %387 = vector.broadcast %386 : vector<1x240xf32> to vector<4x240xf32>
    %388 = arith.mulf %385, %387 : vector<4x240xf32>
    %c4_176 = arith.constant 4 : index
    %c16_177 = arith.constant 16 : index
    %389 = vector.load %arg12[%c4_176, %c16_177] : memref<108x256xf32, #tpu.memory_space<vmem>>, vector<4x240xf32>
    tpu.vector_store %arg12[%c4_176, %c16_177], %388 {strides = array<i32>} : memref<108x256xf32, #tpu.memory_space<vmem>>, vector<4x240xf32>,
    %cst_178 = arith.constant 0.000000e+00 : f32
    %390 = vector.broadcast %cst_178 : f32 to vector<4x16xf32>
    %c4_179 = arith.constant 4 : index
    %c0_180 = arith.constant 0 : index
    %391 = vector.load %arg12[%c4_179, %c0_180] : memref<108x256xf32, #tpu.memory_space<vmem>>, vector<4x16xf32>
    tpu.vector_store %arg12[%c4_179, %c0_180], %390 {strides = array<i32>} : memref<108x256xf32, #tpu.memory_space<vmem>>, vector<4x16xf32>,
    %c1_i32_181 = arith.constant 1 : i32
    %392 = vector.broadcast %c1_i32_181 : i32 to vector<1x256xi32>
    %393 = arith.addi %97, %392 : vector<1x256xi32>
    %c0_i32_182 = arith.constant 0 : i32
    %394 = vector.broadcast %c0_i32_182 : i32 to vector<1x256xi32>
    %395 = arith.cmpi sge, %393, %394 : vector<1x256xi32>
    %c1_i32_183 = arith.constant 1 : i32
    %396 = vector.broadcast %c1_i32_183 : i32 to vector<1x256xi32>
    %397 = arith.addi %97, %396 : vector<1x256xi32>
    %c16_i32_184 = arith.constant 16 : i32
    %398 = vector.broadcast %c16_i32_184 : i32 to vector<1x256xi32>
    %399 = arith.cmpi slt, %397, %398 : vector<1x256xi32>
    %400 = arith.andi %395, %399 : vector<1x256xi1>
    %c-1_i32_185 = arith.constant -1 : i32
    %401 = vector.broadcast %c-1_i32_185 : i32 to vector<1x256xi32>
    %402 = arith.addi %99, %401 : vector<1x256xi32>
    %c0_i32_186 = arith.constant 0 : i32
    %403 = vector.broadcast %c0_i32_186 : i32 to vector<1x256xi32>
    %404 = arith.cmpi sge, %402, %403 : vector<1x256xi32>
    %405 = arith.andi %400, %404 : vector<1x256xi1>
    %c-1_i32_187 = arith.constant -1 : i32
    %406 = vector.broadcast %c-1_i32_187 : i32 to vector<1x256xi32>
    %407 = arith.addi %99, %406 : vector<1x256xi32>
    %c16_i32_188 = arith.constant 16 : i32
    %408 = vector.broadcast %c16_i32_188 : i32 to vector<1x256xi32>
    %409 = arith.cmpi slt, %407, %408 : vector<1x256xi32>
    %410 = arith.andi %405, %409 : vector<1x256xi1>
    %411 = arith.extui %410 : vector<1x256xi1> to vector<1x256xi32>
    %412 = arith.sitofp %411 : vector<1x256xi32> to vector<1x256xf32>
    %413 = vector.extract_strided_slice %333 {offsets = [0, 0], sizes = [4, 241], strides = [1, 1]} : vector<4x256xf32> to vector<4x241xf32>
    %414 = vector.extract_strided_slice %412 {offsets = [0, 15], sizes = [1, 241], strides = [1, 1]} : vector<1x256xf32> to vector<1x241xf32>
    %415 = vector.broadcast %414 : vector<1x241xf32> to vector<4x241xf32>
    %416 = arith.mulf %413, %415 : vector<4x241xf32>
    %c8_189 = arith.constant 8 : index
    %c15_190 = arith.constant 15 : index
    %417 = vector.load %arg12[%c8_189, %c15_190] : memref<108x256xf32, #tpu.memory_space<vmem>>, vector<4x241xf32>
    tpu.vector_store %arg12[%c8_189, %c15_190], %416 {strides = array<i32>} : memref<108x256xf32, #tpu.memory_space<vmem>>, vector<4x241xf32>,
    %cst_191 = arith.constant 0.000000e+00 : f32
    %418 = vector.broadcast %cst_191 : f32 to vector<4x15xf32>
    %c8_192 = arith.constant 8 : index
    %c0_193 = arith.constant 0 : index
    %419 = vector.load %arg12[%c8_192, %c0_193] : memref<108x256xf32, #tpu.memory_space<vmem>>, vector<4x15xf32>
    tpu.vector_store %arg12[%c8_192, %c0_193], %418 {strides = array<i32>} : memref<108x256xf32, #tpu.memory_space<vmem>>, vector<4x15xf32>,
    %c-1_i32_194 = arith.constant -1 : i32
    %420 = vector.broadcast %c-1_i32_194 : i32 to vector<1x256xi32>
    %421 = arith.addi %97, %420 : vector<1x256xi32>
    %c0_i32_195 = arith.constant 0 : i32
    %422 = vector.broadcast %c0_i32_195 : i32 to vector<1x256xi32>
    %423 = arith.cmpi sge, %421, %422 : vector<1x256xi32>
    %c-1_i32_196 = arith.constant -1 : i32
    %424 = vector.broadcast %c-1_i32_196 : i32 to vector<1x256xi32>
    %425 = arith.addi %97, %424 : vector<1x256xi32>
    %c16_i32_197 = arith.constant 16 : i32
    %426 = vector.broadcast %c16_i32_197 : i32 to vector<1x256xi32>
    %427 = arith.cmpi slt, %425, %426 : vector<1x256xi32>
    %428 = arith.andi %423, %427 : vector<1x256xi1>
    %c0_i32_198 = arith.constant 0 : i32
    %429 = vector.broadcast %c0_i32_198 : i32 to vector<1x256xi32>
    %430 = arith.addi %99, %429 : vector<1x256xi32>
    %c0_i32_199 = arith.constant 0 : i32
    %431 = vector.broadcast %c0_i32_199 : i32 to vector<1x256xi32>
    %432 = arith.cmpi sge, %430, %431 : vector<1x256xi32>
    %433 = arith.andi %428, %432 : vector<1x256xi1>
    %c0_i32_200 = arith.constant 0 : i32
    %434 = vector.broadcast %c0_i32_200 : i32 to vector<1x256xi32>
    %435 = arith.addi %99, %434 : vector<1x256xi32>
    %c16_i32_201 = arith.constant 16 : i32
    %436 = vector.broadcast %c16_i32_201 : i32 to vector<1x256xi32>
    %437 = arith.cmpi slt, %435, %436 : vector<1x256xi32>
    %438 = arith.andi %433, %437 : vector<1x256xi1>
    %439 = arith.extui %438 : vector<1x256xi1> to vector<1x256xi32>
    %440 = arith.sitofp %439 : vector<1x256xi32> to vector<1x256xf32>
    %441 = vector.extract_strided_slice %333 {offsets = [0, 0], sizes = [4, 255], strides = [1, 1]} : vector<4x256xf32> to vector<4x255xf32>
    %442 = vector.extract_strided_slice %440 {offsets = [0, 1], sizes = [1, 255], strides = [1, 1]} : vector<1x256xf32> to vector<1x255xf32>
    %443 = vector.broadcast %442 : vector<1x255xf32> to vector<4x255xf32>
    %444 = arith.mulf %441, %443 : vector<4x255xf32>
    %c12_202 = arith.constant 12 : index
    %c1_203 = arith.constant 1 : index
    %445 = vector.load %arg12[%c12_202, %c1_203] : memref<108x256xf32, #tpu.memory_space<vmem>>, vector<4x255xf32>
    tpu.vector_store %arg12[%c12_202, %c1_203], %444 {strides = array<i32>} : memref<108x256xf32, #tpu.memory_space<vmem>>, vector<4x255xf32>,
    %cst_204 = arith.constant 0.000000e+00 : f32
    %446 = vector.broadcast %cst_204 : f32 to vector<4x1xf32>
    %c12_205 = arith.constant 12 : index
    %c0_206 = arith.constant 0 : index
    %447 = vector.load %arg12[%c12_205, %c0_206] : memref<108x256xf32, #tpu.memory_space<vmem>>, vector<4x1xf32>
    tpu.vector_store %arg12[%c12_205, %c0_206], %446 {strides = array<i32>} : memref<108x256xf32, #tpu.memory_space<vmem>>, vector<4x1xf32>,
    %c16_207 = arith.constant 16 : index
    %c0_208 = arith.constant 0 : index
    %448 = vector.load %arg12[%c16_207, %c0_208] : memref<108x256xf32, #tpu.memory_space<vmem>>, vector<4x256xf32>
    tpu.vector_store %arg12[%c16_207, %c0_208], %333 {strides = array<i32>} : memref<108x256xf32, #tpu.memory_space<vmem>>, vector<4x256xf32>,
    %c1_i32_209 = arith.constant 1 : i32
    %449 = vector.broadcast %c1_i32_209 : i32 to vector<1x256xi32>
    %450 = arith.addi %97, %449 : vector<1x256xi32>
    %c0_i32_210 = arith.constant 0 : i32
    %451 = vector.broadcast %c0_i32_210 : i32 to vector<1x256xi32>
    %452 = arith.cmpi sge, %450, %451 : vector<1x256xi32>
    %c1_i32_211 = arith.constant 1 : i32
    %453 = vector.broadcast %c1_i32_211 : i32 to vector<1x256xi32>
    %454 = arith.addi %97, %453 : vector<1x256xi32>
    %c16_i32_212 = arith.constant 16 : i32
    %455 = vector.broadcast %c16_i32_212 : i32 to vector<1x256xi32>
    %456 = arith.cmpi slt, %454, %455 : vector<1x256xi32>
    %457 = arith.andi %452, %456 : vector<1x256xi1>
    %c0_i32_213 = arith.constant 0 : i32
    %458 = vector.broadcast %c0_i32_213 : i32 to vector<1x256xi32>
    %459 = arith.addi %99, %458 : vector<1x256xi32>
    %c0_i32_214 = arith.constant 0 : i32
    %460 = vector.broadcast %c0_i32_214 : i32 to vector<1x256xi32>
    %461 = arith.cmpi sge, %459, %460 : vector<1x256xi32>
    %462 = arith.andi %457, %461 : vector<1x256xi1>
    %c0_i32_215 = arith.constant 0 : i32
    %463 = vector.broadcast %c0_i32_215 : i32 to vector<1x256xi32>
    %464 = arith.addi %99, %463 : vector<1x256xi32>
    %c16_i32_216 = arith.constant 16 : i32
    %465 = vector.broadcast %c16_i32_216 : i32 to vector<1x256xi32>
    %466 = arith.cmpi slt, %464, %465 : vector<1x256xi32>
    %467 = arith.andi %462, %466 : vector<1x256xi1>
    %468 = arith.extui %467 : vector<1x256xi1> to vector<1x256xi32>
    %469 = arith.sitofp %468 : vector<1x256xi32> to vector<1x256xf32>
    %470 = vector.extract_strided_slice %333 {offsets = [0, 1], sizes = [4, 255], strides = [1, 1]} : vector<4x256xf32> to vector<4x255xf32>
    %471 = vector.extract_strided_slice %469 {offsets = [0, 0], sizes = [1, 255], strides = [1, 1]} : vector<1x256xf32> to vector<1x255xf32>
    %472 = vector.broadcast %471 : vector<1x255xf32> to vector<4x255xf32>
    %473 = arith.mulf %470, %472 : vector<4x255xf32>
    %c20 = arith.constant 20 : index
    %c0_217 = arith.constant 0 : index
    %474 = vector.load %arg12[%c20, %c0_217] : memref<108x256xf32, #tpu.memory_space<vmem>>, vector<4x255xf32>
    tpu.vector_store %arg12[%c20, %c0_217], %473 {strides = array<i32>} : memref<108x256xf32, #tpu.memory_space<vmem>>, vector<4x255xf32>,
    %cst_218 = arith.constant 0.000000e+00 : f32
    %475 = vector.broadcast %cst_218 : f32 to vector<4x1xf32>
    %c20_219 = arith.constant 20 : index
    %c255_220 = arith.constant 255 : index
    %476 = vector.load %arg12[%c20_219, %c255_220] : memref<108x256xf32, #tpu.memory_space<vmem>>, vector<4x1xf32>
    tpu.vector_store %arg12[%c20_219, %c255_220], %475 {strides = array<i32>} : memref<108x256xf32, #tpu.memory_space<vmem>>, vector<4x1xf32>,
    %c-1_i32_221 = arith.constant -1 : i32
    %477 = vector.broadcast %c-1_i32_221 : i32 to vector<1x256xi32>
    %478 = arith.addi %97, %477 : vector<1x256xi32>
    %c0_i32_222 = arith.constant 0 : i32
    %479 = vector.broadcast %c0_i32_222 : i32 to vector<1x256xi32>
    %480 = arith.cmpi sge, %478, %479 : vector<1x256xi32>
    %c-1_i32_223 = arith.constant -1 : i32
    %481 = vector.broadcast %c-1_i32_223 : i32 to vector<1x256xi32>
    %482 = arith.addi %97, %481 : vector<1x256xi32>
    %c16_i32_224 = arith.constant 16 : i32
    %483 = vector.broadcast %c16_i32_224 : i32 to vector<1x256xi32>
    %484 = arith.cmpi slt, %482, %483 : vector<1x256xi32>
    %485 = arith.andi %480, %484 : vector<1x256xi1>
    %c1_i32_225 = arith.constant 1 : i32
    %486 = vector.broadcast %c1_i32_225 : i32 to vector<1x256xi32>
    %487 = arith.addi %99, %486 : vector<1x256xi32>
    %c0_i32_226 = arith.constant 0 : i32
    %488 = vector.broadcast %c0_i32_226 : i32 to vector<1x256xi32>
    %489 = arith.cmpi sge, %487, %488 : vector<1x256xi32>
    %490 = arith.andi %485, %489 : vector<1x256xi1>
    %c1_i32_227 = arith.constant 1 : i32
    %491 = vector.broadcast %c1_i32_227 : i32 to vector<1x256xi32>
    %492 = arith.addi %99, %491 : vector<1x256xi32>
    %c16_i32_228 = arith.constant 16 : i32
    %493 = vector.broadcast %c16_i32_228 : i32 to vector<1x256xi32>
    %494 = arith.cmpi slt, %492, %493 : vector<1x256xi32>
    %495 = arith.andi %490, %494 : vector<1x256xi1>
    %496 = arith.extui %495 : vector<1x256xi1> to vector<1x256xi32>
    %497 = arith.sitofp %496 : vector<1x256xi32> to vector<1x256xf32>
    %498 = vector.extract_strided_slice %333 {offsets = [0, 15], sizes = [4, 241], strides = [1, 1]} : vector<4x256xf32> to vector<4x241xf32>
    %499 = vector.extract_strided_slice %497 {offsets = [0, 0], sizes = [1, 241], strides = [1, 1]} : vector<1x256xf32> to vector<1x241xf32>
    %500 = vector.broadcast %499 : vector<1x241xf32> to vector<4x241xf32>
    %501 = arith.mulf %498, %500 : vector<4x241xf32>
    %c24_229 = arith.constant 24 : index
    %c0_230 = arith.constant 0 : index
    %502 = vector.load %arg12[%c24_229, %c0_230] : memref<108x256xf32, #tpu.memory_space<vmem>>, vector<4x241xf32>
    tpu.vector_store %arg12[%c24_229, %c0_230], %501 {strides = array<i32>} : memref<108x256xf32, #tpu.memory_space<vmem>>, vector<4x241xf32>,
    %cst_231 = arith.constant 0.000000e+00 : f32
    %503 = vector.broadcast %cst_231 : f32 to vector<4x15xf32>
    %c24_232 = arith.constant 24 : index
    %c241_233 = arith.constant 241 : index
    %504 = vector.load %arg12[%c24_232, %c241_233] : memref<108x256xf32, #tpu.memory_space<vmem>>, vector<4x15xf32>
    tpu.vector_store %arg12[%c24_232, %c241_233], %503 {strides = array<i32>} : memref<108x256xf32, #tpu.memory_space<vmem>>, vector<4x15xf32>,
    %c0_i32_234 = arith.constant 0 : i32
    %505 = vector.broadcast %c0_i32_234 : i32 to vector<1x256xi32>
    %506 = arith.addi %97, %505 : vector<1x256xi32>
    %c0_i32_235 = arith.constant 0 : i32
    %507 = vector.broadcast %c0_i32_235 : i32 to vector<1x256xi32>
    %508 = arith.cmpi sge, %506, %507 : vector<1x256xi32>
    %c0_i32_236 = arith.constant 0 : i32
    %509 = vector.broadcast %c0_i32_236 : i32 to vector<1x256xi32>
    %510 = arith.addi %97, %509 : vector<1x256xi32>
    %c16_i32_237 = arith.constant 16 : i32
    %511 = vector.broadcast %c16_i32_237 : i32 to vector<1x256xi32>
    %512 = arith.cmpi slt, %510, %511 : vector<1x256xi32>
    %513 = arith.andi %508, %512 : vector<1x256xi1>
    %c1_i32_238 = arith.constant 1 : i32
    %514 = vector.broadcast %c1_i32_238 : i32 to vector<1x256xi32>
    %515 = arith.addi %99, %514 : vector<1x256xi32>
    %c0_i32_239 = arith.constant 0 : i32
    %516 = vector.broadcast %c0_i32_239 : i32 to vector<1x256xi32>
    %517 = arith.cmpi sge, %515, %516 : vector<1x256xi32>
    %518 = arith.andi %513, %517 : vector<1x256xi1>
    %c1_i32_240 = arith.constant 1 : i32
    %519 = vector.broadcast %c1_i32_240 : i32 to vector<1x256xi32>
    %520 = arith.addi %99, %519 : vector<1x256xi32>
    %c16_i32_241 = arith.constant 16 : i32
    %521 = vector.broadcast %c16_i32_241 : i32 to vector<1x256xi32>
    %522 = arith.cmpi slt, %520, %521 : vector<1x256xi32>
    %523 = arith.andi %518, %522 : vector<1x256xi1>
    %524 = arith.extui %523 : vector<1x256xi1> to vector<1x256xi32>
    %525 = arith.sitofp %524 : vector<1x256xi32> to vector<1x256xf32>
    %526 = vector.extract_strided_slice %333 {offsets = [0, 16], sizes = [4, 240], strides = [1, 1]} : vector<4x256xf32> to vector<4x240xf32>
    %527 = vector.extract_strided_slice %525 {offsets = [0, 0], sizes = [1, 240], strides = [1, 1]} : vector<1x256xf32> to vector<1x240xf32>
    %528 = vector.broadcast %527 : vector<1x240xf32> to vector<4x240xf32>
    %529 = arith.mulf %526, %528 : vector<4x240xf32>
    %c28 = arith.constant 28 : index
    %c0_242 = arith.constant 0 : index
    %530 = vector.load %arg12[%c28, %c0_242] : memref<108x256xf32, #tpu.memory_space<vmem>>, vector<4x240xf32>
    tpu.vector_store %arg12[%c28, %c0_242], %529 {strides = array<i32>} : memref<108x256xf32, #tpu.memory_space<vmem>>, vector<4x240xf32>,
    %cst_243 = arith.constant 0.000000e+00 : f32
    %531 = vector.broadcast %cst_243 : f32 to vector<4x16xf32>
    %c28_244 = arith.constant 28 : index
    %c240_245 = arith.constant 240 : index
    %532 = vector.load %arg12[%c28_244, %c240_245] : memref<108x256xf32, #tpu.memory_space<vmem>>, vector<4x16xf32>
    tpu.vector_store %arg12[%c28_244, %c240_245], %531 {strides = array<i32>} : memref<108x256xf32, #tpu.memory_space<vmem>>, vector<4x16xf32>,
    %c1_i32_246 = arith.constant 1 : i32
    %533 = vector.broadcast %c1_i32_246 : i32 to vector<1x256xi32>
    %534 = arith.addi %97, %533 : vector<1x256xi32>
    %c0_i32_247 = arith.constant 0 : i32
    %535 = vector.broadcast %c0_i32_247 : i32 to vector<1x256xi32>
    %536 = arith.cmpi sge, %534, %535 : vector<1x256xi32>
    %c1_i32_248 = arith.constant 1 : i32
    %537 = vector.broadcast %c1_i32_248 : i32 to vector<1x256xi32>
    %538 = arith.addi %97, %537 : vector<1x256xi32>
    %c16_i32_249 = arith.constant 16 : i32
    %539 = vector.broadcast %c16_i32_249 : i32 to vector<1x256xi32>
    %540 = arith.cmpi slt, %538, %539 : vector<1x256xi32>
    %541 = arith.andi %536, %540 : vector<1x256xi1>
    %c1_i32_250 = arith.constant 1 : i32
    %542 = vector.broadcast %c1_i32_250 : i32 to vector<1x256xi32>
    %543 = arith.addi %99, %542 : vector<1x256xi32>
    %c0_i32_251 = arith.constant 0 : i32
    %544 = vector.broadcast %c0_i32_251 : i32 to vector<1x256xi32>
    %545 = arith.cmpi sge, %543, %544 : vector<1x256xi32>
    %546 = arith.andi %541, %545 : vector<1x256xi1>
    %c1_i32_252 = arith.constant 1 : i32
    %547 = vector.broadcast %c1_i32_252 : i32 to vector<1x256xi32>
    %548 = arith.addi %99, %547 : vector<1x256xi32>
    %c16_i32_253 = arith.constant 16 : i32
    %549 = vector.broadcast %c16_i32_253 : i32 to vector<1x256xi32>
    %550 = arith.cmpi slt, %548, %549 : vector<1x256xi32>
    %551 = arith.andi %546, %550 : vector<1x256xi1>
    %552 = arith.extui %551 : vector<1x256xi1> to vector<1x256xi32>
    %553 = arith.sitofp %552 : vector<1x256xi32> to vector<1x256xf32>
    %554 = vector.extract_strided_slice %333 {offsets = [0, 17], sizes = [4, 239], strides = [1, 1]} : vector<4x256xf32> to vector<4x239xf32>
    %555 = vector.extract_strided_slice %553 {offsets = [0, 0], sizes = [1, 239], strides = [1, 1]} : vector<1x256xf32> to vector<1x239xf32>
    %556 = vector.broadcast %555 : vector<1x239xf32> to vector<4x239xf32>
    %557 = arith.mulf %554, %556 : vector<4x239xf32>
    %c32 = arith.constant 32 : index
    %c0_254 = arith.constant 0 : index
    %558 = vector.load %arg12[%c32, %c0_254] : memref<108x256xf32, #tpu.memory_space<vmem>>, vector<4x239xf32>
    tpu.vector_store %arg12[%c32, %c0_254], %557 {strides = array<i32>} : memref<108x256xf32, #tpu.memory_space<vmem>>, vector<4x239xf32>,
    %cst_255 = arith.constant 0.000000e+00 : f32
    %559 = vector.broadcast %cst_255 : f32 to vector<4x17xf32>
    %c32_256 = arith.constant 32 : index
    %c239_257 = arith.constant 239 : index
    %560 = vector.load %arg12[%c32_256, %c239_257] : memref<108x256xf32, #tpu.memory_space<vmem>>, vector<4x17xf32>
    tpu.vector_store %arg12[%c32_256, %c239_257], %559 {strides = array<i32>} : memref<108x256xf32, #tpu.memory_space<vmem>>, vector<4x17xf32>,
    %c0_258 = arith.constant 0 : index
    %c0_259 = arith.constant 0 : index
    %561 = vector.load %arg12[%c0_258, %c0_259] : memref<108x256xf32, #tpu.memory_space<vmem>>, vector<36x256xf32>
    %cst_260 = arith.constant dense<0.000000e+00> : vector<4x256xf32>
    %562 = tpu.matmul %334, %561, %cst_260 {dimension_numbers = #tpu.dot_dimension_numbers<[1], [0], [0], [1], [0, 0, 1, 1], [], []>} : vector<4x36xf32>, vector<36x256xf32>, vector<4x256xf32> -> vector<4x256xf32>
    %563 = vector.broadcast %335 : vector<4x1xf32> to vector<4x256xf32>
    %564 = arith.addf %562, %563 : vector<4x256xf32>
    %cst_261 = arith.constant 0.000000e+00 : f32
    %565 = vector.broadcast %cst_261 : f32 to vector<4x256xf32>
    %566 = arith.maximumf %564, %565 : vector<4x256xf32>
    %c0_262 = arith.constant 0 : index
    %c0_263 = arith.constant 0 : index
    %c0_264 = arith.constant 0 : index
    %567 = vector.load %arg10[%c0_262, %c0_263, %c0_264] : memref<1x4x256xf32, #tpu.memory_space<vmem>>, vector<1x4x256xf32>
    %568 = vector.shape_cast %567 : vector<1x4x256xf32> to vector<4x256xf32>
    %569 = vector.shape_cast %566 : vector<4x256xf32> to vector<1x4x256xf32>
    tpu.vector_store %arg10[%c0_262, %c0_263, %c0_264], %569 {strides = array<i32>} : memref<1x4x256xf32, #tpu.memory_space<vmem>>, vector<1x4x256xf32>,
    return
  }
  func.func @transform_0(%arg0: i32) -> (i32, i32, i32) {
    %c0_i32 = arith.constant 0 : i32
    %c0_i32_0 = arith.constant 0 : i32
    %c0_i32_1 = arith.constant 0 : i32
    return %arg0, %c0_i32, %c0_i32_0 : i32, i32, i32
  }
  func.func @transform_1(%arg0: i32) -> (i32, i32, i32) {
    %c0_i32 = arith.constant 0 : i32
    %c0_i32_0 = arith.constant 0 : i32
    %c0_i32_1 = arith.constant 0 : i32
    return %arg0, %c0_i32, %c0_i32_0 : i32, i32, i32
  }
  func.func @transform_2(%arg0: i32) -> (i32, i32, i32) {
    %c0_i32 = arith.constant 0 : i32
    %c0_i32_0 = arith.constant 0 : i32
    %c0_i32_1 = arith.constant 0 : i32
    return %arg0, %c0_i32, %c0_i32_0 : i32, i32, i32
  }
  func.func @transform_3(%arg0: i32) -> (i32, i32, i32, i32) {
    %c0_i32 = arith.constant 0 : i32
    %c0_i32_0 = arith.constant 0 : i32
    %c0_i32_1 = arith.constant 0 : i32
    %c0_i32_2 = arith.constant 0 : i32
    %c0_i32_3 = arith.constant 0 : i32
    return %c0_i32, %c0_i32_0, %c0_i32_1, %c0_i32_2 : i32, i32, i32, i32
  }
  func.func @transform_4(%arg0: i32) -> (i32, i32) {
    %c0_i32 = arith.constant 0 : i32
    %c0_i32_0 = arith.constant 0 : i32
    %c0_i32_1 = arith.constant 0 : i32
    return %c0_i32, %c0_i32_0 : i32, i32
  }
  func.func @transform_5(%arg0: i32) -> (i32, i32) {
    %c0_i32 = arith.constant 0 : i32
    %c0_i32_0 = arith.constant 0 : i32
    %c0_i32_1 = arith.constant 0 : i32
    return %c0_i32, %c0_i32_0 : i32, i32
  }
  func.func @transform_6(%arg0: i32) -> (i32, i32) {
    %c0_i32 = arith.constant 0 : i32
    %c0_i32_0 = arith.constant 0 : i32
    %c0_i32_1 = arith.constant 0 : i32
    return %c0_i32, %c0_i32_0 : i32, i32
  }
  func.func @transform_7(%arg0: i32) -> (i32, i32) {
    %c0_i32 = arith.constant 0 : i32
    %c0_i32_0 = arith.constant 0 : i32
    %c0_i32_1 = arith.constant 0 : i32
    return %c0_i32, %c0_i32_0 : i32, i32
  }
  func.func @transform_8(%arg0: i32) -> (i32, i32) {
    %c0_i32 = arith.constant 0 : i32
    %c0_i32_0 = arith.constant 0 : i32
    %c0_i32_1 = arith.constant 0 : i32
    return %c0_i32, %c0_i32_0 : i32, i32
  }
  func.func @transform_9(%arg0: i32) -> (i32, i32, i32) {
    %c0_i32 = arith.constant 0 : i32
    %c0_i32_0 = arith.constant 0 : i32
    %c0_i32_1 = arith.constant 0 : i32
    return %arg0, %c0_i32, %c0_i32_0 : i32, i32, i32
  }
}

</mosaic_0001>

<bundles_post_ra>
// kernel: decoder_b1_forward.1
= control target key start
LH: loop header
LB: loop body
LE: loop exit
PB: predicated region body
PF: predicated region fallthrough
CT: control target
= control target key end

     0   :  { %s2541_s30 = smov 0   ;;  %s3753_s0 = inlined_call_operand.vmem [shape: f32[2,8,64], index: 0, kind: input, shape index: {}]   ;;  %s3754_s1 = inlined_call_operand.vmem [shape: f32[2,4,256], index: 1, kind: input, shape index: {}]   ;;  %s3755_s2 = inlined_call_operand.vmem [shape: f32[2,4,256], index: 2, kind: input, shape index: {}]   ;;  %s3756_s3 = inlined_call_operand.vmem [shape: f32[2,2,4,8], index: 3, kind: input, shape index: {}]   ;;  %s3757_s4 = inlined_call_operand.vmem [shape: f32[4,1], index: 4, kind: input, shape index: {}]   ;;  %s3758_s5 = inlined_call_operand.vmem [shape: f32[4,108], index: 5, kind: input, shape index: {}]   ;;  %s3759_s6 = inlined_call_operand.vmem [shape: f32[4,1], index: 6, kind: input, shape index: {}]   ;;  %s3760_s7 = inlined_call_operand.vmem [shape: f32[4,36], index: 7, kind: input, shape index: {}]   ;;  %s3761_s8 = inlined_call_operand.vmem [shape: f32[4,1], index: 8, kind: input, shape index: {}]   ;;  %s3762_s9 = inlined_call_operand.vmem [shape: f32[2,4,256], index: 9, kind: output, shape index: {}]  }
   0x1 LB: > { %s2201_s10 = sadd.s32 4294967295, %s2477_s30   ;;  %p2205_p0 = scmp.ge.s32.totalorder %s2477_s30, 1  ;;  %s2477_s30 = sphi %s2541_s30, %s19_s30  }
   0x2   : > { %p306_p1 = scmp.lt.s32.totalorder %s2477_s30, 3 }
   0x4   : > { %p307_p2 = pnand %p2205_p0, %p306_p1 }
   0x5   : > { %p351_p3 = scmp.lt.s32.totalorder (!%p307_p2), %s2201_s10, 1  ;;  %s2483_s12 = smov (!%p307_p2), 16  }
   0x6   : > { %310 = sbr.rel (%p307_p2) target bundleno = 1349 (0x545), region = 56  ;;  %s2484_s13 = smov (!%p307_p2), 15  }
   0x7   : > { %s2486_s15 = smov (!%p307_p2), 1   ;;  %s2487_s16 = smov (!%p307_p2), 127  }
   0x8   : > { %s2489_s18 = smov (!%p307_p2), 112   ;;  %s2490_s19 = smov (!%p307_p2), 111  }
   0xb   : > { %v371_v0 = vlaneseq  ;;  %v2479_v1 = vmov 0.0   ;;  %vm3768_vm0 = vmmov 0   ;;  %s3900_s10 = smov (!%p351_p3, %s2201_s10), 1  ;;  %v403_v6 = vld [vmem:[%s3756_s3] sm:$0xf]  ;;  %vm3765_vm1 = vcmask 64512  }
   0xc   : > { %2387 = vmatprep.subr.mxu0 %v2479_v1  ;;  %2389 = vmatprep.mubr.msk.f32.mxu0 %vm3768_vm0, %v2479_v1  ;;  %s2555_s11 = sshll.u32 %s3900_s10, 3  ;;  %v2230_v24 = vld [vmem:[%s3756_s3 + $0x4] sm:$0xf]  ;;  %v2481_v32 = vmov 1.0  }
   0xd   : > { %v372_v2 = vand.u32 127, %v371_v0  ;;  %v2552_v3 = vshrl.u32 %v371_v0, 7  ;;  %863 = vmatprep.mubr.f32.mxu1 %v2479_v1  ;;  %s354_s14 = scalar_lea.vmem %s3753_s0, %s2555_s11  ;;  %s359_s17 = scalar_lea.vmem %s3754_s1, %s2555_s11 }
   0xe   : > { %s364_s22 = scalar_lea.vmem %s3755_s2, %s2555_s11  ;;  %v2577_v10 = vld [vmem:[%s354_s14] sm:$0xff]  ;;  %s2485_s14 = smov 17  }
   0xf   : > { %v373_v4 = vadd.s32 128, %v372_v2  ;;  %v382_v5 = vadd.s32 56, %v2552_v3  ;;  %v2569_v7 = vshra.s32 %v372_v2, 4  ;;  %v381_v8 = vadd.s32 48, %v2552_v3  ;;  %v1302_v11 = vld [vmem:[%s359_s17] sm:$0xff]  ;;  %2388 = vmatpush3.msra.mxu0 %v2577_v10  ;;  %s2488_s17 = smov 113   ;;  %s369_s10 = scalar_lea.vmem %s3762_s9, %s2555_s11 }
  0x10   : > { %v380_v9 = vadd.s32 40, %v2552_v3  ;;  %v1304_v16 = vcombine.low %v1302_v11, %v1302_v11  ;;  %1307 = vst [vmem:[#allocation2] sm:$0xf0] %v1302_v11  ;;  %v1308_v17 = vld [vmem:[%s364_s22] sm:$0xff]  ;;  %v2584_v18 = vand.u32 15, %v372_v2  ;;  %2390 = vmatmul.mubr.msk.f32.vlgmr.msra.gmra.mxu0 %vm3765_vm1, %v403_v6  ;;  %2392 = vmatprep.subr.mxu0 %v2479_v1  ;;  %v379_v31 = vadd.s32 32, %v2552_v3 }
  0x11   : > { %v2579_v12 = vshra.s32 %v373_v4, 4  ;;  %v2581_v13 = vand.u32 15, %v373_v4  ;;  %v394_v14 = vshra.s32 %v382_v5, 3  ;;  %v402_v15 = vand.u32 7, %v382_v5  ;;  %1312 = vst [vmem:[#allocation2 + $0x18] sm:$0xf] %v1308_v17  ;;  %2393 = vmatpush3.msra.mxu0 %v2577_v10  ;;  %2394 = vmatprep.mubr.msk.f32.mxu0 %vm3768_vm0, %v2479_v1 }
  0x12   : > { %v393_v19 = vshra.s32 %v381_v8, 3  ;;  %v401_v20 = vand.u32 7, %v381_v8  ;;  %v1310_v21 = vcombine.high %v1308_v17, %v1308_v17  ;;  %1306 = vst [vmem:[#allocation2 + $0x10] sm:$0xf0] %v1304_v16  ;;  %v392_v27 = vshra.s32 %v380_v9, 3 }
  0x13   : > { %v485_v22 = vmul.u32 2, %v394_v14  ;;  %v2588_v23 = vmul.u32 2, %v402_v15  ;;  %v400_v28 = vand.u32 7, %v380_v9  ;;  %v391_v36 = vshra.s32 %v379_v31, 3 }
  0x14   : > { %v2596_v25 = vmul.u32 2, %v393_v19  ;;  %v2598_v26 = vmul.u32 2, %v401_v20  ;;  %1313 = vst [vmem:[#allocation2 + $0x8] sm:$0xf] %v1310_v21  ;;  %2395 = vmatmul.mubr.msk.f32.vlgmr.msra.gmra.mxu0 %vm3765_vm1, %v2230_v24  ;;  %v399_v37 = vand.u32 7, %v379_v31  ;;  %v378_v40 = vadd.s32 24, %v2552_v3 }
  0x15   : > { %vm501_vm2 = vcmp.eq.s32.totalorder %v2579_v12, %v485_v22  ;;  %vm3774_vm3 = vcmp.eq.s32.totalorder %v2581_v13, %v2588_v23  ;;  %v2604_v29 = vadd.s32 1, %v2588_v23  ;;  %v2606_v30 = vadd.s32 1, %v485_v22  ;;  %789 = vmatprep.mubr.f32.mxu0 %v2479_v1 }
  0x16   : > { %vm541_vm4 = vmand %vm501_vm2, %vm3774_vm3  ;;  %vm500_vm5 = vcmp.eq.s32.totalorder %v2569_v7, %v485_v22  ;;  %vm524_vm6 = vcmp.eq.s32.totalorder %v2584_v18, %v2588_v23  ;;  %v2633_v33 = vadd.s32 1, %v2596_v25  ;;  %vm499_vm12 = vcmp.eq.s32.totalorder %v2579_v12, %v2596_v25 }
  0x17   : > { %vm3766_vm7 = vcmp.eq.s32.totalorder %v2581_v13, %v2604_v29  ;;  %2265 = vmatprep.subr.msk.mxu1 %vm541_vm4, %v2481_v32  ;;  %vm540_vm8 = vmand %vm500_vm5, %vm524_vm6  ;;  %vm3764_vm9 = vcmp.eq.s32.totalorder %v2584_v18, %v2604_v29  ;;  %vm3763_vm11 = vcmp.eq.s32.totalorder %v2569_v7, %v2606_v30  ;;  %vm3771_vm13 = vcmp.eq.s32.totalorder %v2581_v13, %v2598_v26 }
  0x18   : > { %vm688_vm10 = vmand %vm501_vm2, %vm3766_vm7  ;;  %2266 = vmatpush1.msk.msra.mxu1 %vm540_vm8, %v2481_v32  ;;  %v2641_v34 = vmul.u32 2, %v392_v27  ;;  %v2643_v35 = vmul.u32 2, %v400_v28  ;;  %vm498_vm15 = vcmp.eq.s32.totalorder %v2569_v7, %v2596_v25  ;;  %vm522_vm2 = vcmp.eq.s32.totalorder %v2584_v18, %v2598_v26 }
  0x19   : > { %2248 = vmatprep.subr.msk.mxu0 %vm688_vm10, %v2481_v32  ;;  %vm687_vm14 = vmand %vm500_vm5, %vm3764_vm9  ;;  %v2665_v39 = vadd.s32 1, %v2598_v26  ;;  %v2696_v42 = vmul.u32 2, %v391_v36  ;;  %v2698_v43 = vmul.u32 2, %v399_v37  ;;  %v390_v45 = vshra.s32 %v378_v40, 3 }
  0x1a   : > { %vm2660_vm4 = vmand %vm3763_vm11, %vm524_vm6  ;;  %2249 = vmatpush1.msk.msra.mxu0 %vm687_vm14, %v2481_v32  ;;  %vm3767_vm6 = vcmp.eq.s32.totalorder %v2569_v7, %v2633_v33  ;;  %v2678_v41 = vadd.s32 1, %v2641_v34  ;;  %vm497_vm10 = vcmp.eq.s32.totalorder %v2579_v12, %v2641_v34  ;;  %vm3770_vm14 = vcmp.eq.s32.totalorder %v2581_v13, %v2643_v35 }
  0x1b   : > { %vm539_vm5 = vmand %vm499_vm12, %vm3771_vm13  ;;  %vm496_vm11 = vcmp.eq.s32.totalorder %v2569_v7, %v2641_v34  ;;  %vm3772_vm9 = vcmp.eq.s32.totalorder %v2584_v18, %v2665_v39  ;;  %v398_v46 = vand.u32 7, %v378_v40  ;;  %v2719_v47 = vadd.s32 1, %v2643_v35  ;;  %v2282_v34 = vld [vmem:[%s3756_s3 + $0x8] sm:$0xf] }
  0x1c   : > { %2267 = vmatprep.subr.msk.mxu1 %vm539_vm5, %v2481_v32  ;;  %vm538_vm8 = vmand %vm498_vm15, %vm522_vm2  ;;  %vm520_vm5 = vcmp.eq.s32.totalorder %v2584_v18, %v2643_v35  ;;  %vm3773_vm7 = vcmp.eq.s32.totalorder %v2569_v7, %v2678_v41  ;;  %v377_v48 = vadd.s32 16, %v2552_v3  ;;  %v2734_v49 = vadd.s32 1, %v2696_v42 }
  0x1d   : > { %2268 = vmatpush1.msk.msra.mxu1 %vm538_vm8, %v2481_v32  ;;  %vm2708_vm8 = vmand %vm3767_vm6, %vm522_vm2  ;;  %vm3775_vm6 = vcmp.eq.s32.totalorder %v2581_v13, %v2665_v39  ;;  %vm3779_vm0 = vcmp.eq.s32.totalorder %v2579_v12, %v2696_v42  ;;  %v2765_v52 = vmul.u32 2, %v390_v45  ;;  %v2767_v53 = vmul.u32 2, %v398_v46 }
  0x1e   : > { %vm537_vm1 = vmand %vm497_vm10, %vm3770_vm14  ;;  %vm3776_vm14 = vcmp.eq.s32.totalorder %v2581_v13, %v2698_v43  ;;  %v389_v54 = vshra.s32 %v377_v48, 3  ;;  %v397_v55 = vand.u32 7, %v377_v48  ;;  %v2785_v56 = vadd.s32 1, %v2698_v43 }
  0x1f   : > { %2269 = vmatprep.subr.msk.mxu1 %vm537_vm1, %v2481_v32  ;;  %vm536_vm2 = vmand %vm496_vm11, %vm520_vm5  ;;  %vm3778_vm3 = vcmp.eq.s32.totalorder %v2569_v7, %v2734_v49  ;;  %v376_v57 = vadd.s32 8, %v2552_v3  ;;  %v2803_v58 = vadd.s32 1, %v2765_v52  ;;  %v2852_v2 = vadd.s32 1, %v2767_v53 }
  0x20   : > { %vm2742_vm1 = vmand %vm498_vm15, %vm3772_vm9  ;;  %2270 = vmatpush1.msk.msra.mxu1 %vm536_vm2, %v2481_v32  ;;  %vm494_vm15 = vcmp.eq.s32.totalorder %v2569_v7, %v2696_v42  ;;  %vm518_vm2 = vcmp.eq.s32.totalorder %v2584_v18, %v2698_v43  ;;  %vm3777_vm9 = vcmp.eq.s32.totalorder %v2584_v18, %v2719_v47  ;;  %v480_v61 = vmul.u32 2, %v389_v54 }
  0x21   : > { %vm2757_vm13 = vmand %vm3773_vm7, %vm520_vm5  ;;  %v2834_v62 = vmul.u32 2, %v397_v55  ;;  %v388_v63 = vshra.s32 %v376_v57, 3  ;;  %v396_v0 = vand.u32 7, %v376_v57  ;;  %v387_v11 = vshra.s32 %v2552_v3, 3 }
  0x22   : > { %vm686_vm5 = vmand %vm499_vm12, %vm3775_vm6  ;;  %vm3781_vm6 = vcmp.eq.s32.totalorder %v2581_v13, %v2767_v53  ;;  %v2868_v4 = vadd.s32 1, %v480_v61  ;;  %v395_v14 = vand.u32 7, %v2552_v3  ;;  %v3834_v16 = vmov 0 }
  0x23   : > { %2250 = vmatprep.subr.msk.mxu0 %vm686_vm5, %v2481_v32  ;;  %vm535_vm7 = vmand %vm3779_vm0, %vm3776_vm14  ;;  %vm3780_vm5 = vcmp.eq.s32.totalorder %v2581_v13, %v2719_v47  ;;  %vm3783_vm0 = vcmp.eq.s32.totalorder %v2569_v7, %v2803_v58  ;;  %v479_v8 = vmul.u32 2, %v388_v63  ;;  %v2897_v9 = vmul.u32 2, %v396_v0 }
  0x24   : > { %2271 = vmatprep.subr.msk.mxu1 %vm535_vm7, %v2481_v32  ;;  %2251 = vmatpush1.msk.msra.mxu0 %vm2742_vm1, %v2481_v32  ;;  %vm534_vm12 = vmand %vm494_vm15, %vm518_vm2  ;;  %vm3784_vm1 = vcmp.eq.s32.totalorder %v2579_v12, %v2765_v52  ;;  %v2916_v15 = vadd.s32 1, %v2834_v62  ;;  %v478_v17 = vmul.u32 2, %v387_v11  ;;  %v2956_v19 = vmul.u32 2, %v395_v14  ;;  %v3423_v11 = vld [vmem:[#allocation2 + $0x18] sm:$0xf] }
  0x25   : > { %vm2811_vm7 = vmand %vm496_vm11, %vm3777_vm9  ;;  %2272 = vmatpush1.msk.msra.mxu1 %vm534_vm12, %v2481_v32  ;;  %vm3785_vm11 = vcmp.eq.s32.totalorder %v2569_v7, %v2765_v52  ;;  %vm516_vm12 = vcmp.eq.s32.totalorder %v2584_v18, %v2767_v53  ;;  %vm3782_vm9 = vcmp.eq.s32.totalorder %v2584_v18, %v2785_v56  ;;  %v2931_v3 = vadd.s32 1, %v479_v8  ;;  %1567 = vst [vmem:[#allocation3 + $0x70] sm:$0xf] %v3423_v11 }
  0x26   : > { %vm2826_vm14 = vmand %vm3778_vm3, %vm518_vm2  ;;  %v3839_v20 = vmov 0  ;;  %v3016_v21 = vadd.s32 1, %v2897_v9  ;;  %v3037_v22 = vadd.s32 1, %v2956_v19  ;;  %v3305_v36 = vadd.s32 4294967295, %v2584_v18 }
  0x27   : > { %vm684_vm2 = vmand %vm497_vm10, %vm3780_vm5  ;;  %vm3787_vm5 = vcmp.eq.s32.totalorder %v2581_v13, %v2834_v62  ;;  %v3308_v37 = vadd.s32 4294967295, %v2581_v13  ;;  %v3311_v38 = vadd.s32 1, %v2584_v18  ;;  %v1328_v46 = vadd.s32 4294967295, %v2569_v7 }
  0x28   : > { %2252 = vmatprep.subr.msk.mxu0 %vm684_vm2, %v2481_v32  ;;  %vm533_vm3 = vmand %vm3784_vm1, %vm3781_vm6  ;;  %vm3786_vm2 = vcmp.eq.s32.totalorder %v2581_v13, %v2785_v56 }
  0x29   : > { %2273 = vmatprep.subr.msk.mxu1 %vm533_vm3, %v2481_v32  ;;  %2253 = vmatpush1.msk.msra.mxu0 %vm2811_vm7, %v2481_v32  ;;  %vm532_vm10 = vmand %vm3785_vm11, %vm516_vm12  ;;  %vm3788_vm7 = vcmp.eq.s32.totalorder %v2579_v12, %v480_v61  ;;  %vm3790_vm11 = vcmp.eq.s32.totalorder %v2569_v7, %v2868_v4 }
  0x2a   : > { %vm2876_vm3 = vmand %vm494_vm15, %vm3782_vm9  ;;  %2274 = vmatpush1.msk.msra.mxu1 %vm532_vm10, %v2481_v32  ;;  %vm3789_vm15 = vcmp.eq.s32.totalorder %v2569_v7, %v480_v61  ;;  %vm514_vm10 = vcmp.eq.s32.totalorder %v2584_v18, %v2834_v62  ;;  %vm3791_vm9 = vcmp.eq.s32.totalorder %v2584_v18, %v2852_v2 }
  0x2b   : > { %vm2890_vm6 = vmand %vm3783_vm0, %vm516_vm12  ;;  %vm3832_vm12 = vcmp.eq.s32.totalorder %v2579_v12, %v2696_v42 }
  0x2c   : > { %vm682_vm0 = vmand %vm3832_vm12, %vm3786_vm2  ;;  %vm3792_vm12 = vcmp.eq.s32.totalorder %v2581_v13, %v2852_v2 }
  0x2d   : > { %2254 = vmatprep.subr.msk.mxu0 %vm682_vm0, %v2481_v32  ;;  %vm531_vm1 = vmand %vm3788_vm7, %vm3787_vm5  ;;  %vm3793_vm5 = vcmp.eq.s32.totalorder %v2581_v13, %v2897_v9 }
  0x2e   : > { %2275 = vmatprep.subr.msk.mxu1 %vm531_vm1, %v2481_v32  ;;  %2255 = vmatpush1.msk.msra.mxu0 %vm2876_vm3, %v2481_v32  ;;  %vm530_vm0 = vmand %vm3789_vm15, %vm514_vm10  ;;  %vm3833_vm1 = vcmp.eq.s32.totalorder %v2569_v7, %v2765_v52  ;;  %vm3794_vm3 = vcmp.eq.s32.totalorder %v2579_v12, %v479_v8  ;;  %vm3796_vm15 = vcmp.eq.s32.totalorder %v2569_v7, %v2931_v3 }
  0x2f   : > { %vm679_vm2 = vmand %vm3833_vm1, %vm3791_vm9  ;;  %2276 = vmatpush1.msk.msra.mxu1 %vm530_vm0, %v2481_v32  ;;  %vm512_vm0 = vcmp.eq.s32.totalorder %v2584_v18, %v2897_v9  ;;  %vm3795_vm1 = vcmp.eq.s32.totalorder %v2584_v18, %v2916_v15 }
  0x30   : > { %vm2949_vm7 = vmand %vm3790_vm11, %vm514_vm10  ;;  %vm3836_vm10 = vcmp.eq.s32.totalorder %v2579_v12, %v2765_v52 }
  0x31   : > { %v3835_v16 = vsel %vm2949_vm7, 4294967295, %v3834_v16  ;;  %vm680_vm11 = vmand %vm3836_vm10, %vm3792_vm12  ;;  %vm3837_vm10 = vcmp.eq.s32.totalorder %v2569_v7, %v479_v8 }
  0x32   : > { %2256 = vmatprep.subr.msk.mxu0 %vm680_vm11, %v2481_v32  ;;  %vm529_vm9 = vmand %vm3794_vm3, %vm3793_vm5  ;;  %vm3797_vm11 = vcmp.eq.s32.totalorder %v2581_v13, %v2916_v15  ;;  %vm3838_vm5 = vcmp.eq.s32.totalorder %v2569_v7, %v480_v61 }
  0x33   : > { %2277 = vmatprep.subr.msk.mxu1 %vm529_vm9, %v2481_v32  ;;  %2257 = vmatpush1.msk.msra.mxu0 %vm679_vm2, %v2481_v32  ;;  %vm528_vm12 = vmand %vm3837_vm10, %vm512_vm0  ;;  %vm3799_vm9 = vcmp.eq.s32.totalorder %v2579_v12, %v478_v17  ;;  %vm3798_vm2 = vcmp.eq.s32.totalorder %v2581_v13, %v2956_v19 }
  0x34   : > { %vm677_vm3 = vmand %vm3838_vm5, %vm3795_vm1  ;;  %2278 = vmatpush1.msk.msra.mxu1 %vm528_vm12, %v2481_v32  ;;  %vm3841_vm5 = vcmp.eq.s32.totalorder %v2579_v12, %v480_v61 }
  0x35   : > { %vm2998_vm10 = vmand %vm3796_vm15, %vm512_vm0  ;;  %vm3801_vm0 = vcmp.eq.s32.totalorder %v2579_v12, %v2606_v30 }
  0x36   : > { %v3840_v20 = vsel %vm2998_vm10, 4294967295, %v3839_v20  ;;  %vm678_vm12 = vmand %vm3841_vm5, %vm3797_vm11  ;;  %vm3800_vm5 = vcmp.eq.s32.totalorder %v2584_v18, %v3016_v21  ;;  %vm486_vm11 = vcmp.eq.s32.totalorder %v2569_v7, %v478_v17  ;;  %vm660_vm10 = vcmp.eq.s32.totalorder %v2581_v13, %v3016_v21 }
  0x37   : > { %2258 = vmatprep.subr.msk.mxu0 %vm678_vm12, %v2481_v32  ;;  %vm527_vm1 = vmand %vm3799_vm9, %vm3798_vm2  ;;  %vm3842_vm12 = vcmp.eq.s32.totalorder %v2581_v13, %v2588_v23  ;;  %vm510_vm2 = vcmp.eq.s32.totalorder %v2584_v18, %v2956_v19  ;;  %v3042_v23 = vadd.s32 1, %v478_v17 }
  0x38   : > { %2279 = vmatprep.subr.msk.mxu1 %vm527_vm1, %v2481_v32  ;;  %2259 = vmatpush1.msk.msra.mxu0 %vm677_vm3, %v2481_v32  ;;  %vm984_vm15 = vmand %vm3801_vm0, %vm3842_vm12  ;;  %vm3843_vm3 = vcmp.eq.s32.totalorder %v2569_v7, %v479_v8  ;;  %vm3844_vm12 = vcmp.eq.s32.totalorder %v2579_v12, %v479_v8  ;;  %vm3804_vm0 = vcmp.eq.s32.totalorder %v2581_v13, %v3037_v22 }
  0x39   : > { %vm675_vm1 = vmand %vm3843_vm3, %vm3800_vm5  ;;  %vm3803_vm5 = vcmp.eq.s32.totalorder %v2584_v18, %v3037_v22  ;;  %vm3802_vm7 = vcmp.eq.s32.totalorder %v2569_v7, %v3042_v23 }
  0x3a   : > { %vm526_vm9 = vmand %vm486_vm11, %vm510_vm2 }
  0x3b   : > { %2280 = vmatpush1.msk.msra.mxu1 %vm526_vm9, %v2481_v32  ;;  %vm676_vm3 = vmand %vm3844_vm12, %vm660_vm10 }
  0x3c   : > { %2260 = vmatprep.subr.msk.mxu0 %vm676_vm3, %v2481_v32  ;;  %2300 = vmatprep.subr.msk.mxu1 %vm984_vm15, %v2481_v32  ;;  %vm673_vm9 = vmand %vm486_vm11, %vm3803_vm5  ;;  %vm3847_vm15 = vcmp.eq.s32.totalorder %v2579_v12, %v478_v17  ;;  %vm962_vm11 = vcmp.eq.s32.totalorder %v2579_v12, %v2734_v49 }
  0x3d   : > { %2261 = vmatpush1.msk.msra.mxu0 %vm675_vm1, %v2481_v32  ;;  %vm3064_vm12 = vmand %vm3802_vm7, %vm510_vm2  ;;  %vm3848_vm2 = vcmp.eq.s32.totalorder %v2581_v13, %v2698_v43  ;;  %vm3851_vm7 = vcmp.eq.s32.totalorder %v2581_v13, %v2598_v26 }
  0x3e   : > { %vm674_vm3 = vmand %vm3847_vm15, %vm3804_vm0  ;;  %vm966_vm15 = vcmp.eq.s32.totalorder %v2579_v12, %v2633_v33 }
  0x3f   : > { %2262 = vmatprep.subr.msk.mxu0 %vm674_vm3, %v2481_v32  ;;  %vm3084_vm1 = vmand %vm962_vm11, %vm3848_vm2  ;;  %vm3805_vm3 = vcmask 523264   ;;  %vm3852_vm2 = vcmp.eq.s32.totalorder %v2581_v13, %v2643_v35  ;;  %v2317_v35 = vld [vmem:[%s3756_s3 + $0xc] sm:$0xf] }
  0x40   : > { %2263 = vmatpush1.msk.msra.mxu0 %vm673_vm9, %v2481_v32  ;;  %vm964_vm9 = vcmp.eq.s32.totalorder %v2579_v12, %v2678_v41  ;;  %vm982_vm5 = vmand %vm966_vm15, %vm3851_vm7  ;;  %vm3855_vm7 = vcmp.eq.s32.totalorder %v2579_v12, %v2606_v30 }
  0x41   : > { %2397 = vmatprep.subr.mxu0 %v2479_v1  ;;  %vm980_vm0 = vmand %vm964_vm9, %vm3852_vm2 }
  0xd0   : > { %v474_v27 = vpop.f32.mrf.mxu0 }
  0xd1   : > { %2281 = vmatmul.mubr.msk.f32.vlgmr.msra.gmra.mxu1 %vm3805_vm3, %v474_v27 }
  0xd2   : > { %v2391_v28 = vpop.f32.mrf.mxu0  ;;  %2301 = vmatpush1.msk.msra.mxu1 %vm2660_vm4, %v2481_v32  ;;  %1084 = vmatprep.mubr.f32.mxu1 %v2479_v1  ;;  %vm3853_vm4 = vmmov 0  }
  0xd3   : > { %2302 = vmatprep.subr.msk.mxu1 %vm982_vm5, %v2481_v32  ;;  %vm3856_vm5 = vcmask 64512  }
  0xd4   : > { %v645_v26 = vpop.f32.mrf.mxu0  ;;  %2303 = vmatpush1.msk.msra.mxu1 %vm2708_vm8, %v2481_v32  ;;  %vm3854_vm8 = vcmp.eq.s32.totalorder %v2581_v13, %v2604_v29 }
  0xd5   : > { %2264 = vmatmul.mubr.msk.f32.vlgmr.msra.gmra.mxu0 %vm3805_vm3, %v645_v26  ;;  %2304 = vmatprep.subr.msk.mxu1 %vm980_vm0, %v2481_v32  ;;  %vm1183_vm0 = vmand %vm3855_vm7, %vm3854_vm8  ;;  %vm3861_vm7 = vcmp.eq.s32.totalorder %v2584_v18, %v2665_v39  ;;  %vm1506_vm3 = vcmp.ge.s32.totalorder %v2579_v12, 0 }
  0xd6   : > { %v2396_v31 = vpop.f32.mrf.mxu0  ;;  %2398 = vmatpush3.msra.mxu0 %v2577_v10  ;;  %2399 = vmatprep.mubr.msk.f32.mxu0 %vm3853_vm4, %v2479_v1  ;;  %vm3860_vm8 = vmmov %vm3856_vm5 }
  0xd7   : > { %2402 = vmatprep.subr.mxu0 %v2479_v1  ;;  %2305 = vmatpush1.msk.msra.mxu1 %vm2757_vm13, %v2481_v32  ;;  %vm3857_vm13 = vcmp.eq.s32.totalorder %v2584_v18, %v2604_v29  ;;  %v1623_v29 = vadd.s32 1, %v2569_v7 }
  0xd8   : > { %2306 = vmatprep.subr.msk.mxu1 %vm3084_vm1, %v2481_v32  ;;  %vm3858_vm1 = vcmp.eq.s32.totalorder %v2569_v7, %v2606_v30  ;;  %v1624_v30 = vadd.s32 1, %v2579_v12 }
  0xd9   : > { %2400 = vmatmul.mubr.msk.f32.vlgmr.msra.gmra.mxu0 %vm3856_vm5, %v2282_v34  ;;  %2307 = vmatpush1.msk.msra.mxu1 %vm2826_vm14, %v2481_v32  ;;  %vm1182_vm2 = vmand %vm3858_vm1, %vm3857_vm13  ;;  %vm3859_vm14 = vcmp.eq.s32.totalorder %v2581_v13, %v2665_v39  ;;  %vm960_vm13 = vcmp.eq.s32.totalorder %v2579_v12, %v2803_v58  ;;  %v1448_v39 = vadd.s32 1, %v2581_v13 }
  0xda   : > { %2403 = vmatpush3.msra.mxu0 %v2577_v10  ;;  %2404 = vmatprep.mubr.msk.f32.mxu0 %vm3853_vm4, %v2479_v1  ;;  %vm1181_vm4 = vmand %vm966_vm15, %vm3859_vm14  ;;  %vm3863_vm15 = vcmp.eq.s32.totalorder %v2581_v13, %v2767_v53  ;;  %v1292_v10 = vld [vmem:[%s3757_s4] sm:$0xf] }
  0xdb   : > { %2335 = vmatprep.subr.msk.mxu0 %vm1183_vm0, %v2481_v32  ;;  %vm3862_vm0 = vcmp.eq.s32.totalorder %v2569_v7, %v2633_v33  ;;  %vm976_vm1 = vmand %vm960_vm13, %vm3863_vm15  ;;  %vm956_vm15 = vcmp.eq.s32.totalorder %v2579_v12, %v2931_v3  ;;  %v2482_v33 = vmov 0  }
  0xdc   : > { %vm1180_vm5 = vmand %vm3862_vm0, %vm3861_vm7  ;;  %2308 = vmatprep.subr.msk.mxu1 %vm976_vm1, %v2481_v32  ;;  %vm3866_vm7 = vcmp.eq.s32.totalorder %v2569_v7, %v2678_v41  ;;  %2427 = vset.pattern.permute.xlu0 %v2482_v33 }
  0xdd   : > { %2405 = vmatmul.mubr.msk.f32.vlgmr.msra.gmra.mxu0 %vm3860_vm8, %v2317_v35  ;;  %2309 = vmatpush1.msk.msra.mxu1 %vm2890_vm6, %v2481_v32  ;;  %vm3865_vm8 = vcmp.eq.s32.totalorder %v2584_v18, %v2719_v47  ;;  %vm3868_vm6 = vcmp.eq.s32.totalorder %v2581_v13, %v2785_v56 }
  0xde   : > { %2336 = vmatpush1.msk.msra.mxu0 %vm1182_vm2, %v2481_v32  ;;  %1283 = vmatprep.mubr.f32.mxu0 %v2479_v1  ;;  %vm3864_vm2 = vcmp.eq.s32.totalorder %v2581_v13, %v2719_v47  ;;  %vm1178_vm0 = vmand %vm3866_vm7, %vm3865_vm8  ;;  %vm3871_vm8 = vcmp.eq.s32.totalorder %v2569_v7, %v2734_v49  ;;  %v1329_v47 = vadd.s32 4294967295, %v2579_v12 }
  0xdf   : > { %2337 = vmatprep.subr.msk.mxu0 %vm1181_vm4, %v2481_v32  ;;  %vm1179_vm14 = vmand %vm964_vm9, %vm3864_vm2  ;;  %vm958_vm4 = vcmp.eq.s32.totalorder %v2579_v12, %v2868_v4  ;;  %vm3867_vm9 = vcmp.eq.s32.totalorder %v2581_v13, %v2834_v62  ;;  %vm3869_vm2 = vnez %v3835_v16  ;;  %1295 = vperm.xlu0 %2427, %v1292_v10  }
  0xe0   : > { %2338 = vmatpush1.msk.msra.mxu0 %vm1180_vm5, %v2481_v32  ;;  %vm974_vm5 = vmand %vm958_vm4, %vm3867_vm9  ;;  %vm954_vm9 = vcmp.eq.s32.totalorder %v2579_v12, %v3042_v23  ;;  %2468 = vset.pattern.permute.xlu1 %v2482_v33 }
  0xe1   : > { %2339 = vmatprep.subr.msk.mxu0 %vm1179_vm14, %v2481_v32  ;;  %2310 = vmatprep.subr.msk.mxu1 %vm974_vm5, %v2481_v32  ;;  %vm1177_vm1 = vmand %vm962_vm11, %vm3868_vm6  ;;  %vm3870_vm14 = vcmp.eq.s32.totalorder %v2584_v18, %v2785_v56  ;;  %vm3873_vm5 = vcmp.eq.s32.totalorder %v2581_v13, %v2852_v2 }
  0xe2   : > { %2340 = vmatpush1.msk.msra.mxu0 %vm1178_vm0, %v2481_v32  ;;  %2311 = vmatpush1.msk.msra.mxu1 %vm3869_vm2, %v2481_v32  ;;  %vm1176_vm7 = vmand %vm3871_vm8, %vm3870_vm14  ;;  %vm3872_vm0 = vcmp.eq.s32.totalorder %v2581_v13, %v2897_v9  ;;  %vm3875_vm2 = vcmp.eq.s32.totalorder %v2584_v18, %v2852_v2  ;;  %vm3876_vm14 = vcmp.eq.s32.totalorder %v2569_v7, %v2803_v58 }
  0xe3   : > { %2341 = vmatprep.subr.msk.mxu0 %vm1177_vm1, %v2481_v32  ;;  %vm972_vm11 = vmand %vm956_vm15, %vm3872_vm0  ;;  %vm3874_vm1 = vnez %v3840_v20  ;;  %vm3878_vm0 = vcmp.eq.s32.totalorder %v2581_v13, %v2916_v15 }
  0xe4   : > { %2342 = vmatpush1.msk.msra.mxu0 %vm1176_vm7, %v2481_v32  ;;  %2312 = vmatprep.subr.msk.mxu1 %vm972_vm11, %v2481_v32  ;;  %vm1175_vm6 = vmand %vm960_vm13, %vm3873_vm5  ;;  %vm3877_vm7 = vcmp.eq.s32.totalorder %v2581_v13, %v2956_v19  ;;  %vm3879_vm5 = vcmp.eq.s32.totalorder %v2584_v18, %v2916_v15  ;;  %v3431_v19 = vld [vmem:[#allocation2 + $0x8] sm:$0xf] }
  0xe5   : > { %2343 = vmatprep.subr.msk.mxu0 %vm1175_vm6, %v2481_v32  ;;  %2313 = vmatpush1.msk.msra.mxu1 %vm3874_vm1, %v2481_v32  ;;  %vm1174_vm8 = vmand %vm3876_vm14, %vm3875_vm2  ;;  %vm3880_vm6 = vcmp.eq.s32.totalorder %v2569_v7, %v2868_v4  ;;  %vm3882_vm2 = vcmp.eq.s32.totalorder %v2569_v7, %v2931_v3  ;;  %1568 = vst [vmem:[#allocation3 + $0x78] sm:$0xf] %v3431_v19 }
  0xe6   : > { %2344 = vmatpush1.msk.msra.mxu0 %vm1174_vm8, %v2481_v32  ;;  %vm970_vm13 = vmand %vm954_vm9, %vm3877_vm7  ;;  %vm3883_vm8 = vcmp.eq.s32.totalorder %v2581_v13, %v3037_v22 }
  0xe7   : > { %2314 = vmatprep.subr.msk.mxu1 %vm970_vm13, %v2481_v32  ;;  %vm1173_vm11 = vmand %vm958_vm4, %vm3878_vm0  ;;  %vm1626_vm0 = vcmp.ge.s32.totalorder %v1624_v30, 0 }
  0xe8   : > { %2345 = vmatprep.subr.msk.mxu0 %vm1173_vm11, %v2481_v32  ;;  %2315 = vmatpush1.msk.msra.mxu1 %vm3064_vm12, %v2481_v32  ;;  %vm1172_vm1 = vmand %vm3880_vm6, %vm3879_vm5  ;;  %vm3881_vm12 = vcmp.eq.s32.totalorder %v2584_v18, %v3016_v21  ;;  %vm1629_vm11 = vcmp.lt.s32.totalorder %v1623_v29, 16  ;;  %vm1630_vm5 = vcmp.lt.s32.totalorder %v1624_v30, 16 }
  0xe9   : > { %2346 = vmatpush1.msk.msra.mxu0 %vm1172_vm1, %v2481_v32  ;;  %vm1171_vm4 = vmand %vm956_vm15, %vm660_vm10  ;;  %vm3884_vm10 = vcmp.eq.s32.totalorder %v2584_v18, %v3037_v22  ;;  %vm3885_vm15 = vcmp.eq.s32.totalorder %v2569_v7, %v3042_v23  ;;  %vm1322_vm1 = vcmp.ge.s32.totalorder %v3305_v36, 0 }
  0xea   : > { %2347 = vmatprep.subr.msk.mxu0 %vm1171_vm4, %v2481_v32  ;;  %vm1170_vm14 = vmand %vm3882_vm2, %vm3881_vm12  ;;  %vm1323_vm4 = vcmp.ge.s32.totalorder %v3308_v37, 0 }
  0xeb   : > { %2348 = vmatpush1.msk.msra.mxu0 %vm1170_vm14, %v2481_v32  ;;  %vm1169_vm7 = vmand %vm954_vm9, %vm3883_vm8  ;;  %vm1625_vm9 = vcmp.ge.s32.totalorder %v1623_v29, 0  ;;  %vm1451_vm8 = vcmp.lt.s32.totalorder %v3311_v38, 16 }
  0xec   : > { %2349 = vmatprep.subr.msk.mxu0 %vm1169_vm7, %v2481_v32  ;;  %vm1168_vm13 = vmand %vm3885_vm15, %vm3884_vm10  ;;  %vm1452_vm10 = vcmp.lt.s32.totalorder %v1448_v39, 16 }
  0xed   : > { %2350 = vmatpush1.msk.msra.mxu0 %vm1168_vm13, %v2481_v32  ;;  %vm1679_vm6 = vmand %vm1625_vm9, %vm1629_vm11 }
  0xee   : > { %vm1680_vm12 = vmand %vm1626_vm0, %vm1630_vm5  ;;  %v2364_v18 = vsel %vm1679_vm6, 1.0, %v2479_v1 }
  0xef   : > { %v2365_v32 = vsel %vm1680_vm12, 1.0, %v2479_v1  ;;  %vm1627_vm2 = vmand %vm1322_vm1, %vm1625_vm9  ;;  %vm1505_vm12 = vcmp.ge.s32.totalorder %v2569_v7, 0 }
  0xf0   : > { %v2433_v40 = vpack.i.bf16 %v2365_v32, %v2364_v18  ;;  %vm1628_vm14 = vmand %vm1323_vm4, %vm1626_vm0 }
  0xf1   : > { %vm1631_vm7 = vmand %vm1627_vm2, %vm1629_vm11 }
  0xf2   : > { %2434 = vrot.lane.b32.xlu1 %v2433_v40, %s2483_s12  ;;  %vm1632_vm15 = vmand %vm1628_vm14, %vm1630_vm5  ;;  %v2362_v13 = vsel %vm1631_vm7, 1.0, %v2479_v1  ;;  %vm1509_vm7 = vcmp.lt.s32.totalorder %v2569_v7, 16 }
  0xf3   : > { %v2363_v41 = vsel %vm1632_vm15, 1.0, %v2479_v1  ;;  %vm1731_vm13 = vmand %vm1451_vm8, %vm1625_vm9  ;;  %vm1510_vm9 = vcmp.lt.s32.totalorder %v2579_v12, 16 }
  0xf4   : > { %v2438_v42 = vpack.i.bf16 %v2363_v41, %v2362_v13  ;;  %vm1732_vm6 = vmand %vm1452_vm10, %vm1626_vm0 }
  0xf5   : > { %vm1733_vm2 = vmand %vm1731_vm13, %vm1629_vm11 }
  0xf6   : > { %2439 = vrot.lane.b32.xlu1 %v2438_v42, %s2484_s13  ;;  %vm1734_vm14 = vmand %vm1732_vm6, %vm1630_vm5  ;;  %v2366_v43 = vsel %vm1733_vm2, 1.0, %v2479_v1  ;;  %vm1330_vm2 = vcmp.ge.s32.totalorder %v1328_v46, 0 }
  0xf7   : > { %v2367_v44 = vsel %vm1734_vm14, 1.0, %v2479_v1  ;;  %vm1569_vm0 = vmand %vm1451_vm8, %vm1505_vm12 }
  0xf8   : > { %v2428_v45 = vpack.i.bf16 %v2367_v44, %v2366_v43  ;;  %vm1570_vm11 = vmand %vm1452_vm10, %vm1506_vm3 }
  0xf9   : > { %vm1571_vm5 = vmand %vm1569_vm0, %vm1509_vm7  ;;  %vm1331_vm0 = vcmp.ge.s32.totalorder %v1329_v47, 0 }
  0xfa   : > { %2429 = vrot.lane.b32.xlu0 %v2428_v45, %s2485_s14  ;;  %vm1572_vm15 = vmand %vm1570_vm11, %vm1510_vm9  ;;  %v2360_v48 = vsel %vm1571_vm5, 1.0, %v2479_v1  ;;  %vm1335_vm5 = vcmp.lt.s32.totalorder %v1329_v47, 16 }
  0xfb   : > { %v2361_v49 = vsel %vm1572_vm15, 1.0, %v2479_v1  ;;  %vm1507_vm13 = vmand %vm1322_vm1, %vm1505_vm12  ;;  %vm1334_vm12 = vcmp.lt.s32.totalorder %v1328_v46, 16 }
  0xfc   : > { %v2443_v50 = vpack.i.bf16 %v2361_v49, %v2360_v48  ;;  %vm1508_vm6 = vmand %vm1323_vm4, %vm1506_vm3 }
  0xfd   : > { %vm1511_vm14 = vmand %vm1507_vm13, %vm1509_vm7 }
  0xfe   : > { %2444 = vrot.lane.b32.xlu0 %v2443_v50, %s2486_s15  ;;  %vm1512_vm11 = vmand %vm1508_vm6, %vm1510_vm9  ;;  %v2358_v51 = vsel %vm1511_vm14, 1.0, %v2479_v1 }
  0xff   : > { %v2359_v52 = vsel %vm1512_vm11, 1.0, %v2479_v1  ;;  %vm1455_vm3 = vmand %vm1451_vm8, %vm1330_vm2 }
 0x100   : > { %v2448_v53 = vpack.i.bf16 %v2359_v52, %v2358_v51  ;;  %vm1456_vm7 = vmand %vm1452_vm10, %vm1331_vm0 }
 0x101   : > { %vm1457_vm15 = vmand %vm1455_vm3, %vm1334_vm12  ;;  %vm3812_vm3 = vcmask 1044344  }
 0x102   : > { %2449 = vrot.lane.b32.xlu1 %v2448_v53, %s2487_s16  ;;  %vm1458_vm9 = vmand %vm1456_vm7, %vm1335_vm5  ;;  %v2356_v7 = vsel %vm1457_vm15, 1.0, %v2479_v1  ;;  %vm3808_vm7 = vcmask 920576   ;;  %vm3807_vm15 = vcmask 1044360  }
 0x103   : > { %v2357_v12 = vsel %vm1458_vm9, 1.0, %v2479_v1  ;;  %vm1392_vm13 = vmand %vm1330_vm2, %vm1334_vm12  ;;  %vm1348_vm9 = vcmask 908288  }
 0x104   : > { %v2453_v54 = vpack.i.bf16 %v2357_v12, %v2356_v7  ;;  %vm1393_vm8 = vmand %vm1331_vm0, %vm1335_vm5  ;;  %v2354_v55 = vsel %vm1392_vm13, 1.0, %v2479_v1  ;;  %vm3806_vm13 = vcmask 1043456  }
 0x105   : > { %v2355_v56 = vsel %vm1393_vm8, 1.0, %v2479_v1  ;;  %vm1332_vm10 = vmand %vm1322_vm1, %vm1330_vm2  ;;  %vm3886_vm1 = vcmask 523264   ;;  %vm1368_vm2 = vcmask 138240   ;;  %vm1499_vm8 = vcmask 1043576  }
 0x106   : > { %2454 = vrot.lane.b32.xlu0 %v2453_v54, %s2488_s17  ;;  %v2458_v57 = vpack.i.bf16 %v2355_v56, %v2354_v55  ;;  %vm1333_vm6 = vmand %vm1323_vm4, %vm1331_vm0  ;;  %vm1489_vm0 = vcmask 121856  }
 0x107   : > { %vm1336_vm14 = vmand %vm1332_vm10, %vm1334_vm12  ;;  %vm3809_vm12 = vcmask 924672   ;;  %vm1503_vm10 = vcmask 117760  }
 0x108   : > { %2459 = vrot.lane.b32.xlu1 %v2458_v57, %s2489_s18  ;;  %vm1337_vm11 = vmand %vm1333_vm6, %vm1335_vm5  ;;  %v2352_v58 = vsel %vm1336_vm14, 1.0, %v2479_v1  ;;  %vm1773_vm5 = vcmask 904192   ;;  %vm3815_vm6 = vcmask 1039360   ;;  %vm1549_vm14 = vcmask 7168  }
 0x109   : > { %v2353_v59 = vsel %vm1337_vm11, 1.0, %v2479_v1  ;;  %vm3887_vm4 = vmmov %vm3886_vm1  ;;  %vm1431_vm11 = vcmask 130048  }
 0x10a   : > { %v2463_v60 = vpack.i.bf16 %v2353_v59, %v2352_v58 }
 0x10c   : > { %2464 = vrot.lane.b32.xlu0 %v2463_v60, %s2490_s19 }
 0x15a   : > { %v3419_v8 = vpop.permute.xlu0 %1295 }
 0x164   : > { %v3417_v5 = vpop.permute.xlu1 %2434 }
 0x165   : > { %v3496_v60 = vunpack.i.l.bf16 %v3417_v5 }
 0x168   : > { %v2440_v6 = vpop.permute.xlu1 %2439 }
 0x169   : > { %v3421_v9 = vunpack.i.l.bf16 %v2440_v6  ;;  %v2442_v17 = vunpack.i.h.bf16 %v2440_v6 }
 0x16b   : > { %v1648_v15 = vmul.f32 %v3421_v9, %v3423_v11  ;;  %v3443_v22 = vsel %vm1489_vm0, %v3421_v9, %v2442_v17  ;;  %v2437_v17 = vunpack.i.h.bf16 %v3417_v5 }
 0x16c   : > { %v2430_v14 = vpop.permute.xlu0 %2429  ;;  %v1649_v23 = vmul.f32 %v3443_v22, %v3431_v19 }
 0x16d   : > { %v2432_v3 = vunpack.i.h.bf16 %v2430_v14  ;;  %v3428_v16 = vunpack.i.l.bf16 %v2430_v14  ;;  %1658 = vrot.lane.b32.xlu1 %v1648_v15, %s2488_s17 }
 0x16f   : > { %v3435_v20 = vsel %vm1368_vm2, %v3428_v16, %v2432_v3  ;;  %v1750_v25 = vmul.f32 %v3428_v16, %v3423_v11 }
 0x170   : > { %v1751_v21 = vmul.f32 %v3435_v20, %v3431_v19  ;;  %v3447_v24 = vpop.permute.xlu0 %2444 }
 0x171   : > { %1760 = vrot.lane.b32.xlu0 %v1750_v25, %s2490_s19  ;;  %v2447_v3 = vunpack.i.h.bf16 %v3447_v24  ;;  %v1696_v25 = vmul.f32 %v3496_v60, %v3423_v11 }
 0x172   : > { %1762 = vrot.lane.b32.xlu1 %v1751_v21, %s2490_s19 }
 0x174   : > { %v2450_v10 = vpop.permute.xlu1 %2449 }
 0x175   : > { %v3487_v55 = vunpack.i.h.bf16 %v2450_v10  ;;  %v2451_v56 = vunpack.i.l.bf16 %v2450_v10 }
 0x176   : > { %1660 = vrot.lane.b32.xlu1 %v1649_v23, %s2488_s17 }
 0x178   : > { %v2455_v27 = vpop.permute.xlu0 %2454 }
 0x179   : > { %v3453_v28 = vunpack.i.h.bf16 %v2455_v27  ;;  %v2456_v26 = vunpack.i.l.bf16 %v2455_v27 }
 0x17a   : > { %v3465_v29 = vpop.permute.xlu1 %2459 }
 0x17b   : > { %v1476_v31 = vmul.f32 %v3453_v28, %v3431_v19  ;;  %v3459_v34 = vsel %vm3809_vm12, %v2456_v26, %v3453_v28 }
 0x17c   : > { %v1475_v35 = vmul.f32 %v3459_v34, %v3423_v11 }
 0x17d   : > { %1487 = vrot.lane.b32.xlu0 %v1476_v31, %s2484_s13 }
 0x17e   : > { %1485 = vrot.lane.b32.xlu1 %v1475_v35, %s2484_s13  ;;  %v3468_v36 = vpop.permute.xlu0 %2464  ;;  %v1704_v35 = vrot.slane %v1696_v25, 4 }
 0x191   : > { %v865_v18 = vpop.f32.mrf.mxu1 }
 0x193   : > { %v867_v13 = vpop.f32.mrf.mxu1 }
 0x195   : > { %v3409_v61 = vpop.f32.mrf.mxu0 }
 0x196   : > { %v866_v42 = vadd.f32 %v865_v18, %v3409_v61 }
 0x197   : > { %v3411_v62 = vpop.f32.mrf.mxu0 }
 0x198   : > { %v868_v46 = vadd.f32 %v867_v13, %v3411_v62  ;;  %v3503_v62 = vsel %vm3815_vm6, %v2451_v56, %v3487_v55 }
 0x199   : > { %v941_v63 = vpop.f32.mrf.mxu0 }
 0x19a   : > { %2316 = vmatmul.mubr.msk.f32.vlgmr.msra.gmra.mxu1 %vm3886_vm1, %v941_v63  ;;  %vm1404_vm1 = vcmask 916480  }
 0x19b   : > { %v2401_v0 = vpop.f32.mrf.mxu0  ;;  %1886 = vmatprep.mubr.f32.mxu1 %v2479_v1 }
 0x19d   : > { %v1164_v2 = vpop.f32.mrf.mxu0 }
 0x19e   : > { %2351 = vmatmul.mubr.msk.f32.vlgmr.msra.gmra.mxu0 %vm3887_vm4, %v1164_v2  ;;  %v3511_v2 = vunpack.i.l.bf16 %v3447_v24  ;;  %v3535_v24 = vsel %vm1431_vm11, %v3496_v60, %v2437_v17  ;;  %vm1775_vm4 = vcmask 1048440  }
 0x19f   : > { %v2406_v4 = vpop.f32.mrf.mxu0  ;;  %2108 = vmatprep.mubr.f32.mxu0 %v2479_v1 }
 0x1a0   : > { %v3531_v26 = vsel %vm1549_vm14, %v3511_v2, %v2447_v3  ;;  %v1588_v10 = vmul.f32 %v3511_v2, %v3423_v11  ;;  %v1319_v3 = vld [vmem:[%s3759_s6] sm:$0xf] }
 0x1df   : > { %v1659_v30 = vpop.permute.xlu1 %1658 }
 0x1e3   : > { %v1761_v39 = vpop.permute.xlu0 %1760 }
 0x1e4   : > { %v1763_v33 = vpop.permute.xlu1 %1762 }
 0x1e5   : > { %1774 = vst.msk [vmem:[#allocation3 + $0xd8] sm:$0xf] %vm1773_vm5, %v1763_v33  ;;  %v1765_v32 = vsel %vm1348_vm9, %v1761_v39, %v1763_v33  ;;  %v1596_v39 = vrot.slane %v1588_v10, 4 }
 0x1e6   : > { %1778 = vst.msk [vmem:[#allocation3 + $0xd8] sm:$0xf] %vm3812_vm3, %v2479_v1  ;;  %1772 = vst [vmem:[#allocation3 + $0xd0] sm:$0xf] %v1765_v32  ;;  %v3551_v32 = vunpack.i.h.bf16 %v3465_v29  ;;  %vm1496_vm3 = vcmask 1047672  }
 0x1e8   : > { %v1661_v37 = vpop.permute.xlu1 %1660 }
 0x1e9   : > { %v1663_v38 = vsel %vm3809_vm12, %v1659_v30, %v1661_v37  ;;  %1672 = vst.msk [vmem:[#allocation3 + $0xa8] sm:$0xf] %vm3808_vm7, %v1661_v37  ;;  %v1697_v37 = vmul.f32 %v3535_v24, %v3431_v19  ;;  %vm3810_vm7 = vcmask 7172  }
 0x1ea   : > { %1670 = vst [vmem:[#allocation3 + $0xa0] sm:$0xf] %v1663_v38  ;;  %1676 = vst.msk [vmem:[#allocation3 + $0xa8] sm:$0xf] %vm3807_vm15, %v2479_v1  ;;  %vm3811_vm15 = vcmask 1047564  }
 0x1ed   : > { %v1806_v40 = vld [vmem:[#allocation3 + $0xd8] sm:$0xf]  ;;  %v1805_v45 = vld [vmem:[#allocation3 + $0xd0] sm:$0xf] }
 0x1ee   : > { %2368 = vmatprep.subr.msk.mxu1 %vm3806_vm13, %v1806_v40  ;;  %v2461_v40 = vunpack.i.l.bf16 %v3465_v29  ;;  %v1589_v29 = vmul.f32 %v3531_v26, %v3431_v19 }
 0x1ef   : > { %v1488_v43 = vpop.permute.xlu0 %1487  ;;  %2369 = vmatpush1.msk.msra.mxu1 %vm3806_vm13, %v1805_v45 }
 0x1f0   : > { %v1486_v48 = vpop.permute.xlu1 %1485 }
 0x1f1   : > { %v1491_v50 = vsel %vm1489_vm0, %v1486_v48, %v1488_v43  ;;  %1500 = vst.msk [vmem:[#allocation3 + $0x40] sm:$0xf] %vm1499_vm8, %v1486_v48  ;;  %v3560_v43 = vsel %vm1404_vm1, %v2461_v40, %v3551_v32 }
 0x1f2   : > { %1501 = vst [vmem:[#allocation3 + $0x48] sm:$0xf] %v1491_v50  ;;  %1504 = vst.msk [vmem:[#allocation3 + $0x40] sm:$0xf] %vm1503_vm10, %v2479_v1  ;;  %v3576_v50 = vunpack.i.h.bf16 %v3468_v36 }
 0x1f4   : > { %v1355_v56 = vmul.f32 %v3576_v50, %v3431_v19 }
 0x25a   : > { %v1086_v41 = vpop.f32.mrf.mxu1 }
 0x25b   : > { %v1091_v47 = vadd.f32 %v1086_v41, %v866_v42  ;;  %v1706_v41 = vrot.slane %v1697_v37, 4 }
 0x25c   : > { %v1088_v44 = vpop.f32.mrf.mxu1 }
 0x25d   : > { %v1092_v51 = vadd.f32 %v1088_v44, %v868_v46 }
 0x25e   : > { %v1285_v49 = vpop.f32.mrf.mxu0 }
 0x25f   : > { %v1290_v52 = vadd.f32 %v1285_v49, %v1091_v47  ;;  %v1410_v47 = vmul.f32 %v3560_v43, %v3423_v11  ;;  %v1598_v49 = vrot.slane %v1589_v29, 4 }
 0x260   : > { %v1287_v53 = vpop.f32.mrf.mxu0 }
 0x261   : > { %v1298_v7 = vadd.f32 %v3419_v8, %v1290_v52  ;;  %v1291_v12 = vadd.f32 %v1287_v53, %v1092_v51  ;;  %v2466_v51 = vunpack.i.l.bf16 %v3468_v36 }
 0x263   : > { %1300 = vst [vmem:[#allocation2 + $0x10] sm:$0xf] %v1298_v7  ;;  %v1299_v54 = vadd.f32 %v3419_v8, %v1291_v12  ;;  %v1529_v8 = vmul.f32 %v3503_v62, %v3423_v11  ;;  %v1419_v7 = vrot.slane %v1410_v47, 4  ;;  %v3592_v36 = vsel %vm1348_vm9, %v2466_v51, %v3576_v50 }
 0x265   : > { %1301 = vst [vmem:[#allocation2] sm:$0xf] %v1299_v54  ;;  %v1537_v23 = vrot.slane %v1529_v8, 4  ;;  %v1530_v54 = vmul.f32 %v3487_v55, %v3431_v19 }
 0x26a   : > { %v3489_v57 = vld [vmem:[#allocation2 + $0x10] sm:$0xff] }
 0x26b   : > { %v1748_v58 = vmul.f32 %v3428_v16, %v3489_v57  ;;  %v1646_v63 = vmul.f32 %v3421_v9, %v3489_v57  ;;  %v1694_v0 = vmul.f32 %v3496_v60, %v3489_v57  ;;  %v1527_v6 = vmul.f32 %v3503_v62, %v3489_v57 }
 0x26c   : > { %v3493_v59 = vld [vmem:[#allocation2] sm:$0xff]  ;;  %v1586_v15 = vmul.f32 %v3511_v2, %v3489_v57  ;;  %v1473_v45 = vmul.f32 %v3459_v34, %v3489_v57  ;;  %v1408_v46 = vmul.f32 %v3560_v43, %v3489_v57 }
 0x26d   : > { %1756 = vrot.lane.b32.xlu0 %v1748_v58, %s2490_s19  ;;  %v1749_v61 = vmul.f32 %v3435_v20, %v3493_v59  ;;  %v1647_v4 = vmul.f32 %v3443_v22, %v3493_v59  ;;  %v1702_v14 = vrot.slane %v1694_v0, 4  ;;  %v1535_v21 = vrot.slane %v1527_v6, 4 }
 0x26e   : > { %v1594_v27 = vrot.slane %v1586_v15, 4  ;;  %v1587_v5 = vmul.f32 %v3531_v26, %v3493_v59  ;;  %v1695_v30 = vmul.f32 %v3535_v24, %v3493_v59  ;;  %v1528_v44 = vmul.f32 %v3487_v55, %v3493_v59 }
 0x26f   : > { %1758 = vrot.lane.b32.xlu1 %v1749_v61, %s2490_s19  ;;  %v1538_v31 = vsel %vm3806_vm13, %v1535_v21, %v1537_v23  ;;  %v1705_v33 = vsel %vm3806_vm13, %v1702_v14, %v1704_v35  ;;  %v1417_v53 = vrot.slane %v1408_v46, 4  ;;  %v1474_v12 = vmul.f32 %v3453_v28, %v3493_v59 }
 0x270   : > { %v1595_v38 = vrot.slane %v1587_v5, 4  ;;  %v1703_v18 = vrot.slane %v1695_v30, 4  ;;  %v1597_v13 = vsel %vm3806_vm13, %v1594_v27, %v1596_v39  ;;  %v1536_v48 = vrot.slane %v1528_v44, 4 }
 0x271   : > { %1654 = vrot.lane.b32.xlu0 %v1646_v63, %s2488_s17  ;;  %v1420_v58 = vsel %vm3806_vm13, %v1417_v53, %v1419_v7  ;;  %v1354_v61 = vmul.f32 %v3592_v36, %v3423_v11  ;;  %v1539_v63 = vrot.slane %v1530_v54, 4  ;;  %v1409_v0 = vmul.f32 %v3551_v32, %v3493_v59 }
 0x272   : > { %v1707_v42 = vsel %vm3806_vm13, %v1703_v18, %v1706_v41  ;;  %v1599_v52 = vsel %vm3806_vm13, %v1595_v38, %v1598_v49  ;;  %v1411_v6 = vmul.f32 %v3551_v32, %v3431_v19  ;;  %v1352_v11 = vmul.f32 %v3592_v36, %v3489_v57 }
 0x273   : > { %1656 = vrot.lane.b32.xlu1 %v1647_v4, %s2488_s17  ;;  %v1540_v4 = vsel %vm3806_vm13, %v1536_v48, %v1539_v63  ;;  %v1418_v8 = vrot.slane %v1409_v0, 4  ;;  %v1353_v19 = vmul.f32 %v3576_v50, %v3493_v59 }
 0x275   : > { %1708 = vrot.lane.b32.xlu0 %v1702_v14, %s2489_s18  ;;  %v1421_v14 = vrot.slane %v1411_v6, 4 }
 0x277   : > { %1541 = vrot.lane.b32.xlu1 %v1535_v21, %s2486_s15  ;;  %v1422_v15 = vsel %vm3806_vm13, %v1418_v8, %v1421_v14  ;;  %vm1673_vm13 = vcmask 1048456  }
 0x279   : > { %1600 = vrot.lane.b32.xlu0 %v1594_v27, %s2487_s16 }
 0x27b   : > { %1545 = vrot.lane.b32.xlu1 %v1538_v31, %s2486_s15 }
 0x27d   : > { %1712 = vrot.lane.b32.xlu0 %v1705_v33, %s2489_s18 }
 0x27f   : > { %1602 = vrot.lane.b32.xlu1 %v1595_v38, %s2487_s16 }
 0x281   : > { %1604 = vrot.lane.b32.xlu0 %v1597_v13, %s2487_s16 }
 0x283   : > { %1714 = vrot.lane.b32.xlu1 %v1707_v42, %s2489_s18 }
 0x285   : > { %1710 = vrot.lane.b32.xlu0 %v1703_v18, %s2489_s18 }
 0x287   : > { %1481 = vrot.lane.b32.xlu1 %v1473_v45, %s2484_s13 }
 0x289   : > { %1543 = vrot.lane.b32.xlu0 %v1536_v48, %s2486_s15 }
 0x28b   : > { %1606 = vrot.lane.b32.xlu1 %v1599_v52, %s2487_s16 }
 0x28d   : > { %1483 = vrot.lane.b32.xlu0 %v1474_v12, %s2484_s13 }
 0x28f   : > { %1427 = vrot.lane.b32.xlu1 %v1420_v58, %s2483_s12 }
 0x291   : > { %1366 = vrot.lane.b32.xlu0 %v1355_v56, %s2485_s14 }
 0x293   : > { %1364 = vrot.lane.b32.xlu1 %v1354_v61, %s2485_s14 }
 0x295   : > { %1547 = vrot.lane.b32.xlu0 %v1540_v4, %s2486_s15 }
 0x297   : > { %1423 = vrot.lane.b32.xlu1 %v1417_v53, %s2483_s12 }
 0x299   : > { %1425 = vrot.lane.b32.xlu0 %v1418_v8, %s2483_s12 }
 0x29b   : > { %1360 = vrot.lane.b32.xlu1 %v1352_v11, %s2485_s14 }
 0x29d   : > { %1429 = vrot.lane.b32.xlu0 %v1422_v15, %s2483_s12 }
 0x29f   : > { %1809 = vperm.xlu1 %2468, %v1319_v3  }
 0x2a1   : > { %1362 = vrot.lane.b32.xlu0 %v1353_v19, %s2485_s14 }
 0x2df   : > { %v1757_v17 = vpop.permute.xlu0 %1756 }
 0x2e1   : > { %v1759_v21 = vpop.permute.xlu1 %1758 }
 0x2e2   : > { %v1764_v23 = vsel %vm1348_vm9, %v1757_v17, %v1759_v21  ;;  %1771 = vst.msk [vmem:[#allocation3 + $0xc8] sm:$0xff] %vm1348_vm9, %v1759_v21 }
 0x2e3   : > { %1776 = vst.msk [vmem:[#allocation3 + $0xc8] sm:$0xff] %vm1775_vm4, %v2479_v1  ;;  %v1655_v25 = vpop.permute.xlu0 %1654  ;;  %vm1559_vm4 = vcmask 1047560  }
 0x2e5   : > { %v1657_v27 = vpop.permute.xlu1 %1656 }
 0x2e6   : > { %v3622_v5 = vsel %vm3809_vm12, %v1655_v25, %v1657_v27  ;;  %1669 = vst.msk [vmem:[#allocation3 + $0x98] sm:$0xff] %vm3809_vm12, %v1657_v27  ;;  %vm3813_vm12 = vcmask 1048572  }
 0x2e7   : > { %1674 = vst.msk [vmem:[#allocation3 + $0x98] sm:$0xff] %vm1673_vm13, %v2479_v1  ;;  %v1709_v31 = vpop.permute.xlu0 %1708  ;;  %vm3814_vm13 = vcmask 1039364  }
 0x2e9   : > { %v1542_v35 = vpop.permute.xlu1 %1541 }
 0x2ea   : > { %1557 = vst.msk [vmem:[#allocation3 + $0x40] sm:$0xf0] %vm3811_vm15, %v1542_v35  ;;  %v1804_v10 = vld [vmem:[#allocation3 + $0xc8] sm:$0xff]  ;;  %vm1723_vm15 = vcmask 916484  }
 0x2eb   : > { %1563 = vst.msk [vmem:[#allocation3 + $0x40] sm:$0xf0] %vm3810_vm7, %v2479_v1  ;;  %v1601_v30 = vpop.permute.xlu0 %1600  ;;  %1828 = vmatprep.subr.mxu1 %v1804_v10  ;;  %vm1729_vm7 = vcmask 1048448   ;;  %v1318_v10 = vld [vmem:[%s3758_s5] sm:$0xf] }
 0x2ec   : > { %1829 = vmatpush1.msra.mxu1 %v1764_v23 }
 0x2ed   : > { %v3629_v33 = vpop.permute.xlu1 %1545 }
 0x2ee   : > { %1560 = vst.msk [vmem:[#allocation3 + $0x50] sm:$0xff] %vm1559_vm4, %v3629_v33  ;;  %vm1727_vm4 = vcmask 1048452   ;;  %v1798_v7 = vld [vmem:[#allocation3 + $0x98] sm:$0xff] }
 0x2ef   : > { %1564 = vst.msk [vmem:[#allocation3 + $0x50] sm:$0xff] %vm1549_vm14, %v2479_v1  ;;  %v1713_v37 = vpop.permute.xlu0 %1712 }
 0x2f1   : > { %v1603_v38 = vpop.permute.xlu1 %1602 }
 0x2f2   : > { %v1608_v39 = vsel %vm3815_vm6, %v1601_v30, %v1603_v38  ;;  %1616 = vst.msk [vmem:[#allocation3 + $0x78] sm:$0xf0] %vm3814_vm13, %v1603_v38  ;;  %vm1444_vm13 = vcmask 130052   ;;  %v1787_v19 = vld [vmem:[#allocation3 + $0x40] sm:$0xff] }
 0x2f3   : > { %1614 = vst [vmem:[#allocation3 + $0x70] sm:$0xf0] %v1608_v39  ;;  %1620 = vst.msk [vmem:[#allocation3 + $0x78] sm:$0xf0] %vm3813_vm12, %v2479_v1  ;;  %v1605_v18 = vpop.permute.xlu0 %1604  ;;  %vm1621_vm12 = vcmask 1048568  }
 0x2f5   : > { %v1715_v40 = vpop.permute.xlu1 %1714 }
 0x2f6   : > { %v1717_v13 = vsel %vm1404_vm1, %v1713_v37, %v1715_v40  ;;  %1726 = vst.msk [vmem:[#allocation3 + $0xb8] sm:$0xff] %vm1404_vm1, %v1715_v40  ;;  %v1789_v11 = vld [vmem:[#allocation3 + $0x50] sm:$0xff] }
 0x2f7   : > { %1730 = vst.msk [vmem:[#allocation3 + $0xb8] sm:$0xff] %vm1729_vm7, %v2479_v1  ;;  %v1711_v41 = vpop.permute.xlu0 %1710  ;;  %vm1441_vm7 = vcmask 1047680  }
 0x2f8   : > { %v1716_v42 = vsel %vm1404_vm1, %v1709_v31, %v1711_v41  ;;  %1724 = vst.msk [vmem:[#allocation3 + $0xa8] sm:$0xf0] %vm1723_vm15, %v1711_v41 }
 0x2f9   : > { %1722 = vst [vmem:[#allocation3 + $0xa0] sm:$0xf0] %v1716_v42  ;;  %1728 = vst.msk [vmem:[#allocation3 + $0xa8] sm:$0xf0] %vm1727_vm4, %v2479_v1  ;;  %v1482_v44 = vpop.permute.xlu1 %1481 }
 0x2fa   : > { %1497 = vst.msk [vmem:[#allocation3 + $0x30] sm:$0xff] %vm1496_vm3, %v1482_v44  ;;  %vm1382_vm3 = vcmask 134144   ;;  %v1794_v63 = vld [vmem:[#allocation3 + $0x78] sm:$0xff]  ;;  %v1793_v8 = vld [vmem:[#allocation3 + $0x70] sm:$0xff] }
 0x2fb   : > { %1502 = vst.msk [vmem:[#allocation3 + $0x30] sm:$0xff] %vm1489_vm0, %v2479_v1  ;;  %v1544_v29 = vpop.permute.xlu0 %1543 }
 0x2fc   : > { %v1550_v45 = vsel %vm1549_vm14, %v1542_v35, %v1544_v29 }
 0x2fd   : > { %1558 = vst [vmem:[#allocation3 + $0x48] sm:$0xf0] %v1550_v45  ;;  %v1607_v46 = vpop.permute.xlu1 %1606 }
 0x2fe   : > { %v1609_v47 = vsel %vm3815_vm6, %v1605_v18, %v1607_v46  ;;  %1618 = vst.msk [vmem:[#allocation3 + $0x88] sm:$0xff] %vm3815_vm6, %v1607_v46  ;;  %v1802_v48 = vld [vmem:[#allocation3 + $0xb8] sm:$0xff]  ;;  %vm1375_vm6 = vcmask 1047688  }
 0x2ff   : > { %1622 = vst.msk [vmem:[#allocation3 + $0x88] sm:$0xff] %vm1621_vm12, %v2479_v1  ;;  %1830 = vmatprep.subr.mxu1 %v1802_v48  ;;  %v1484_v49 = vpop.permute.xlu0 %1483  ;;  %vm1378_vm12 = vcmask 1043592  }
 0x300   : > { %v1490_v51 = vsel %vm1489_vm0, %v1482_v44, %v1484_v49  ;;  %1831 = vmatpush1.msra.mxu1 %v1717_v13  ;;  %v1800_v52 = vld [vmem:[#allocation3 + $0xa8] sm:$0xff]  ;;  %v1799_v53 = vld [vmem:[#allocation3 + $0xa0] sm:$0xff] }
 0x301   : > { %1498 = vst [vmem:[#allocation3 + $0x38] sm:$0xff] %v1490_v51  ;;  %1832 = vmatprep.subr.mxu1 %v1800_v52  ;;  %v1428_v12 = vpop.permute.xlu1 %1427 }
 0x302   : > { %1442 = vst.msk [vmem:[#allocation3 + $0x20] sm:$0xff] %vm1441_vm7, %v1428_v12  ;;  %1833 = vmatpush1.msra.mxu1 %v1799_v53  ;;  %vm1438_vm7 = vcmask 1047684  }
 0x303   : > { %1446 = vst.msk [vmem:[#allocation3 + $0x20] sm:$0xff] %vm1431_vm11, %v2479_v1  ;;  %1834 = vmatprep.subr.mxu1 %v1798_v7  ;;  %v1367_v54 = vpop.permute.xlu0 %1366 }
 0x304   : > { %1835 = vmatpush1.msra.mxu1 %v3622_v5  ;;  %v1788_v17 = vld [vmem:[#allocation3 + $0x48] sm:$0xff] }
 0x305   : > { %v1365_v56 = vpop.permute.xlu1 %1364 }
 0x306   : > { %v1370_v58 = vsel %vm1368_vm2, %v1365_v56, %v1367_v54  ;;  %1379 = vst.msk [vmem:[#allocation3 + $0x10] sm:$0xf] %vm1378_vm12, %v1365_v56  ;;  %v1796_v61 = vld [vmem:[#allocation3 + $0x88] sm:$0xff] }
 0x307   : > { %1380 = vst [vmem:[#allocation3 + $0x18] sm:$0xf] %v1370_v58  ;;  %1383 = vst.msk [vmem:[#allocation3 + $0x10] sm:$0xf] %vm1382_vm3, %v2479_v1  ;;  %1836 = vmatprep.subr.mxu1 %v1796_v61  ;;  %v1548_v0 = vpop.permute.xlu0 %1547 }
 0x308   : > { %v1551_v4 = vsel %vm1549_vm14, %v3629_v33, %v1548_v0  ;;  %1837 = vmatpush1.msra.mxu1 %v1609_v47 }
 0x309   : > { %1838 = vmatprep.subr.mxu1 %v1794_v63  ;;  %v1424_v6 = vpop.permute.xlu1 %1423 }
 0x30a   : > { %1439 = vst.msk [vmem:[#allocation3 + $0x10] sm:$0xf0] %vm1438_vm7, %v1424_v6  ;;  %1839 = vmatpush1.msra.mxu1 %v1793_v8  ;;  %v1783_v25 = vld [vmem:[#allocation3 + $0x20] sm:$0xff] }
 0x30b   : > { %1445 = vst.msk [vmem:[#allocation3 + $0x10] sm:$0xf0] %vm1444_vm13, %v2479_v1  ;;  %1840 = vmatprep.subr.mxu1 %v3493_v59  ;;  %v1426_v14 = vpop.permute.xlu0 %1425  ;;  %v1785_v59 = vld [vmem:[#allocation3 + $0x30] sm:$0xff] }
 0x30c   : > { %v1432_v15 = vsel %vm1431_vm11, %v1424_v6, %v1426_v14  ;;  %1841 = vmatpush1.msra.mxu1 %v3489_v57 }
 0x30d   : > { %1440 = vst [vmem:[#allocation3 + $0x18] sm:$0xf0] %v1432_v15  ;;  %v1361_v3 = vpop.permute.xlu1 %1360  ;;  %1842 = vmatprep.subr.mxu1 %v1551_v4 }
 0x30e   : > { %1376 = vst.msk [vmem:[#allocation3] sm:$0xff] %vm1375_vm6, %v1361_v3  ;;  %1843 = vmatpush1.msra.mxu1 %v1789_v11  ;;  %vm1812_vm6 = vcmask 883712  }
 0x30f   : > { %1381 = vst.msk [vmem:[#allocation3] sm:$0xff] %vm1368_vm2, %v2479_v1  ;;  %v1430_v21 = vpop.permute.xlu0 %1429  ;;  %1844 = vmatprep.subr.mxu1 %v1788_v17 }
 0x310   : > { %v1433_v23 = vsel %vm1431_vm11, %v1428_v12, %v1430_v21  ;;  %1845 = vmatpush1.msra.mxu1 %v1787_v19 }
 0x311   : > { %1443 = vst [vmem:[#allocation3 + $0x28] sm:$0xff] %v1433_v23  ;;  %1846 = vmatprep.subr.mxu1 %v1490_v51 }
 0x312   : > { %1847 = vmatpush1.msra.mxu1 %v1785_v59  ;;  %v1781_v27 = vld [vmem:[#allocation3 + $0x10] sm:$0xff] }
 0x313   : > { %v1363_v57 = vpop.permute.xlu0 %1362  ;;  %1848 = vmatprep.subr.mxu1 %v1433_v23 }
 0x314   : > { %v1369_v5 = vsel %vm1368_vm2, %v1361_v3, %v1363_v57  ;;  %1849 = vmatpush1.msra.mxu1 %v1783_v25  ;;  %v1782_v31 = vld [vmem:[#allocation3 + $0x18] sm:$0xff] }
 0x315   : > { %1377 = vst [vmem:[#allocation3 + $0x8] sm:$0xff] %v1369_v5  ;;  %1850 = vmatprep.subr.mxu1 %v1782_v31 }
 0x316   : > { %1851 = vmatpush1.msra.mxu1 %v1781_v27  ;;  %v1779_v35 = vld [vmem:[#allocation3] sm:$0xff] }
 0x317   : > { %1852 = vmatprep.subr.mxu1 %v1369_v5 }
 0x318   : > { %1853 = vmatpush1.msra.mxu1 %v1779_v35 }
 0x319   : > { %2370 = vmatmul.mubr.msk.f32.vlgmr.msra.gmra.mxu1 %vm1812_vm6, %v1318_v10  ;;  %vm3898_vm6 = vcmask 1048572  }
 0x31a   : > { %v1810_v30 = vpop.permute.xlu1 %1809 }
 0x3d9   : > { %v1888_v33 = vpop.f32.mrf.mxu1 }
 0x3da   : > { %v1889_v37 = vadd.f32 %v1888_v33, %v1810_v30 }
 0x3db   : > { %v1890_v38 = vpop.f32.mrf.mxu1 }
 0x3dc   : > { %v1893_v39 = vmax.f32 %v1889_v37, 0.0  ;;  %v1891_v18 = vadd.f32 %v1890_v38, %v1810_v30  ;;  %v1895_v38 = vld [vmem:[%s3760_s7] sm:$0xf] }
 0x3de   : > { %1957 = vst [vmem:[#allocation3 + $0x20] sm:$0xf] %v1893_v39  ;;  %v1894_v40 = vmax.f32 %v1891_v18, 0.0  ;;  %v2005_v13 = vmul.f32 %v3428_v16, %v1893_v39  ;;  %v1975_v41 = vmul.f32 %v3421_v9, %v1893_v39  ;;  %v1989_v42 = vmul.f32 %v3496_v60, %v1893_v39 }
 0x3df   : > { %v1927_v29 = vmul.f32 %v1893_v39, %v3459_v34  ;;  %v1959_v45 = vmul.f32 %v3511_v2, %v1893_v39  ;;  %v1897_v16 = vmul.f32 %v1893_v39, %v3592_v36  ;;  %v1941_v36 = vmul.f32 %v1893_v39, %v3503_v62 }
 0x3e0   : > { %1958 = vst [vmem:[#allocation3 + $0x28] sm:$0xf] %v1894_v40  ;;  %2009 = vrot.lane.b32.xlu1 %v2005_v13, %s2490_s19  ;;  %1979 = vrot.lane.b32.xlu0 %v1975_v41, %s2488_s17  ;;  %v1993_v44 = vrot.slane %v1989_v42, 4  ;;  %v1928_v9 = vmul.f32 %v3453_v28, %v1894_v40  ;;  %v2006_v60 = vmul.f32 %v1894_v40, %v3435_v20 }
 0x3e1   : > { %v1963_v46 = vrot.slane %v1959_v45, 4  ;;  %v1898_v34 = vmul.f32 %v3576_v50, %v1894_v40  ;;  %v1976_v2 = vmul.f32 %v1894_v40, %v3443_v22  ;;  %v1990_v47 = vmul.f32 %v1894_v40, %v3535_v24 }
 0x3e2   : > { %v1945_v28 = vrot.slane %v1941_v36, 4  ;;  %v1942_v20 = vmul.f32 %v3487_v55, %v1894_v40  ;;  %v1960_v49 = vmul.f32 %v1894_v40, %v3531_v26  ;;  %v1912_v24 = vmul.f32 %v3551_v32, %v1894_v40  ;;  %v1896_v55 = vld [vmem:[%s3761_s8] sm:$0xf] }
 0x3e3   : > { %v1994_v48 = vrot.slane %v1990_v47, 4  ;;  %v1911_v62 = vmul.f32 %v1893_v39, %v3560_v43 }
 0x3e4   : > { %1995 = vrot.lane.b32.xlu1 %v1993_v44, %s2489_s18  ;;  %1931 = vrot.lane.b32.xlu0 %v1927_v29, %s2484_s13  ;;  %v1946_v50 = vrot.slane %v1942_v20, 4  ;;  %v1964_v22 = vrot.slane %v1960_v49, 4  ;;  %v1916_v51 = vrot.slane %v1912_v24, 4 }
 0x3e5   : > { %v1915_v52 = vrot.slane %v1911_v62, 4 }
 0x3e8   : > { %1965 = vrot.lane.b32.xlu1 %v1963_v46, %s2487_s16  ;;  %1901 = vrot.lane.b32.xlu0 %v1897_v16, %s2485_s14 }
 0x3ec   : > { %1933 = vrot.lane.b32.xlu1 %v1928_v9, %s2484_s13  ;;  %2011 = vrot.lane.b32.xlu0 %v2006_v60, %s2490_s19 }
 0x3f0   : > { %1903 = vrot.lane.b32.xlu1 %v1898_v34, %s2485_s14  ;;  %1981 = vrot.lane.b32.xlu0 %v1976_v2, %s2488_s17 }
 0x3f4   : > { %1997 = vrot.lane.b32.xlu1 %v1994_v48, %s2489_s18  ;;  %1947 = vrot.lane.b32.xlu0 %v1945_v28, %s2486_s15 }
 0x3f8   : > { %1949 = vrot.lane.b32.xlu1 %v1946_v50, %s2486_s15  ;;  %1967 = vrot.lane.b32.xlu0 %v1964_v22, %s2487_s16 }
 0x3fc   : > { %1919 = vrot.lane.b32.xlu1 %v1916_v51, %s2483_s12  ;;  %1917 = vrot.lane.b32.xlu0 %v1915_v52, %s2483_s12 }
 0x400   : > { %2031 = vperm.xlu0 %2427, %v1896_v55  }
 0x452   : > { %v2010_v26 = vpop.permute.xlu1 %2009  ;;  %v1980_v53 = vpop.permute.xlu0 %1979 }
 0x456   : > { %v1996_v32 = vpop.permute.xlu1 %1995  ;;  %v1932_v7 = vpop.permute.xlu0 %1931 }
 0x457   : > { %1938 = vst.msk [vmem:[#allocation3 + $0x10] sm:$0xf] %vm1499_vm8, %v1932_v7  ;;  %vm3888_vm8 = vcmask 1044344  }
 0x458   : > { %1940 = vst.msk [vmem:[#allocation3 + $0x10] sm:$0xf] %vm1503_vm10, %v2479_v1  ;;  %vm3889_vm10 = vcmask 924672  }
 0x45a   : > { %v1966_v43 = vpop.permute.xlu1 %1965  ;;  %v1902_v12 = vpop.permute.xlu0 %1901 }
 0x45b   : > { %1908 = vst.msk [vmem:[#allocation3] sm:$0xf] %vm1378_vm12, %v1902_v12  ;;  %vm3890_vm12 = vcmask 920576  }
 0x45c   : > { %1910 = vst.msk [vmem:[#allocation3] sm:$0xf] %vm1382_vm3, %v2479_v1 }
 0x45e   : > { %v1934_v54 = vpop.permute.xlu1 %1933  ;;  %v2012_v56 = vpop.permute.xlu0 %2011 }
 0x45f   : > { %v1935_v58 = vsel %vm1489_vm0, %v1932_v7, %v1934_v54  ;;  %v2013_v61 = vsel %vm1348_vm9, %v2010_v26, %v2012_v56  ;;  %2017 = vst.msk [vmem:[#allocation3 + $0x48] sm:$0xf] %vm1773_vm5, %v2012_v56  ;;  %vm3891_vm0 = vcmask 1044360   ;;  %vm3892_vm5 = vcmask 1047564  }
 0x460   : > { %1939 = vst [vmem:[#allocation3 + $0x18] sm:$0xf] %v1935_v58  ;;  %2016 = vst [vmem:[#allocation3 + $0x40] sm:$0xf] %v2013_v61  ;;  %vm3894_vm9 = vcmask 1043456  }
 0x461   : > { %2018 = vst.msk [vmem:[#allocation3 + $0x48] sm:$0xf] %vm3888_vm8, %v2479_v1  ;;  %vm3895_vm3 = vmmov %vm3894_vm9 }
 0x462   : > { %v1904_v63 = vpop.permute.xlu1 %1903  ;;  %v1982_v0 = vpop.permute.xlu0 %1981 }
 0x463   : > { %v1905_v4 = vsel %vm1368_vm2, %v1902_v12, %v1904_v63  ;;  %v1983_v6 = vsel %vm3889_vm10, %v1980_v53, %v1982_v0  ;;  %1987 = vst.msk [vmem:[#allocation3 + $0x38] sm:$0xf] %vm3890_vm12, %v1982_v0  ;;  %vm3893_vm2 = vcmask 7172  }
 0x464   : > { %1909 = vst [vmem:[#allocation3 + $0x8] sm:$0xf] %v1905_v4  ;;  %1986 = vst [vmem:[#allocation3 + $0x30] sm:$0xf] %v1983_v6 }
 0x465   : > { %1988 = vst.msk [vmem:[#allocation3 + $0x38] sm:$0xf] %vm3891_vm0, %v2479_v1 }
 0x466   : > { %v1998_v8 = vpop.permute.xlu1 %1997  ;;  %v1948_v14 = vpop.permute.xlu0 %1947 }
 0x467   : > { %v1999_v11 = vsel %vm1404_vm1, %v1996_v32, %v1998_v8  ;;  %2003 = vst.msk [vmem:[#allocation3 + $0x38] sm:$0xf0] %vm1723_vm15, %v1998_v8  ;;  %v2027_v3 = vld [vmem:[#allocation3 + $0x40] sm:$0xf]  ;;  %vm3896_vm15 = vcmask 1039360   ;;  %vm3897_vm1 = vcmask 1039364  }
 0x468   : > { %1954 = vst.msk [vmem:[#allocation3 + $0x10] sm:$0xf0] %vm3892_vm5, %v1948_v14  ;;  %v2028_v15 = vld [vmem:[#allocation3 + $0x48] sm:$0xf]  ;;  %2002 = vst [vmem:[#allocation3 + $0x30] sm:$0xf0] %v1999_v11 }
 0x469   : > { %2004 = vst.msk [vmem:[#allocation3 + $0x38] sm:$0xf0] %vm1727_vm4, %v2479_v1  ;;  %2371 = vmatprep.subr.msk.mxu0 %vm3894_vm9, %v2028_v15 }
 0x46a   : > { %1956 = vst.msk [vmem:[#allocation3 + $0x10] sm:$0xf0] %vm3893_vm2, %v2479_v1  ;;  %2372 = vmatpush1.msk.msra.mxu0 %vm3895_vm3, %v2027_v3  ;;  %v1950_v19 = vpop.permute.xlu1 %1949  ;;  %v1968_v17 = vpop.permute.xlu0 %1967 }
 0x46b   : > { %v1951_v21 = vsel %vm1549_vm14, %v1948_v14, %v1950_v19  ;;  %v1969_v59 = vsel %vm3896_vm15, %v1966_v43, %v1968_v17  ;;  %1973 = vst.msk [vmem:[#allocation3 + $0x28] sm:$0xf0] %vm3897_vm1, %v1968_v17  ;;  %vm2034_vm14 = vcmask 293888  }
 0x46c   : > { %1955 = vst [vmem:[#allocation3 + $0x18] sm:$0xf0] %v1951_v21  ;;  %1972 = vst [vmem:[#allocation3 + $0x20] sm:$0xf0] %v1969_v59 }
 0x46d   : > { %1974 = vst.msk [vmem:[#allocation3 + $0x28] sm:$0xf0] %vm3898_vm6, %v2479_v1 }
 0x46e   : > { %v1920_v23 = vpop.permute.xlu1 %1919  ;;  %v1918_v25 = vpop.permute.xlu0 %1917 }
 0x46f   : > { %v1921_v57 = vsel %vm1431_vm11, %v1918_v25, %v1920_v23  ;;  %1924 = vst.msk [vmem:[#allocation3] sm:$0xf0] %vm1438_vm7, %v1918_v25  ;;  %v2025_v5 = vld [vmem:[#allocation3 + $0x30] sm:$0xff] }
 0x470   : > { %v2026_v27 = vld [vmem:[#allocation3 + $0x38] sm:$0xff]  ;;  %1925 = vst [vmem:[#allocation3 + $0x8] sm:$0xf0] %v1921_v57  ;;  %1926 = vst.msk [vmem:[#allocation3] sm:$0xf0] %vm1444_vm13, %v2479_v1 }
 0x471   : > { %2068 = vmatprep.subr.mxu0 %v2026_v27  ;;  %v2021_v10 = vld [vmem:[#allocation3 + $0x10] sm:$0xff] }
 0x472   : > { %2069 = vmatpush1.msra.mxu0 %v2025_v5 }
 0x473   : > { %v2023_v35 = vld [vmem:[#allocation3 + $0x20] sm:$0xff]  ;;  %v2022_v30 = vld [vmem:[#allocation3 + $0x18] sm:$0xff] }
 0x474   : > { %v2024_v31 = vld [vmem:[#allocation3 + $0x28] sm:$0xff] }
 0x475   : > { %2070 = vmatprep.subr.mxu0 %v2024_v31 }
 0x476   : > { %2071 = vmatpush1.msra.mxu0 %v2023_v35 }
 0x477   : > { %2072 = vmatprep.subr.mxu0 %v2022_v30  ;;  %v2020_v33 = vld [vmem:[#allocation3 + $0x8] sm:$0xff]  ;;  %v2019_v37 = vld [vmem:[#allocation3] sm:$0xff] }
 0x478   : > { %2073 = vmatpush1.msra.mxu0 %v2021_v10 }
 0x479   : > { %2074 = vmatprep.subr.mxu0 %v2020_v33 }
 0x47a   : > { %2075 = vmatpush1.msra.mxu0 %v2019_v37 }
 0x47b   : > { %2373 = vmatmul.mubr.msk.f32.vlgmr.msra.gmra.mxu0 %vm2034_vm14, %v1895_v38  ;;  %v2032_v1 = vpop.permute.xlu0 %2031 }
 0x53b   : > { %v2110_v39 = vpop.f32.mrf.mxu0 }
 0x53c   : > { %v2111_v18 = vadd.f32 %v2110_v39, %v2032_v1 }
 0x53d   : > { %v2112_v40 = vpop.f32.mrf.mxu0 }
 0x53e   : > { %v2113_v13 = vadd.f32 %v2112_v40, %v2032_v1  ;;  %v2115_v41 = vmax.f32 %v2111_v18, 0.0 }
 0x540   : > { %v2116_v42 = vmax.f32 %v2113_v13, 0.0 }
 0x542   : > { %v2119_v44 = vcombine.low %v2115_v41, %v2116_v42 }
 0x544   : > { %2121 = vst [vmem:[%s369_s10] sm:$0xff] %v2119_v44 }
 0x545 PF: > { %s19_s30 = sadd.s32 1, %s2477_s30  }
 0x546   : > { %p16_p4 = scmp.ge.s32.totalorder %s19_s30, 4  }
 0x548   :  { %18 = sbr.rel (!%p16_p4) target bundleno = 1 (0x1), region = 95 }

</bundles_post_ra>
